<compile_context>
chip_gen: v6e
topology: v6e:2x2x1
jax: 0.10.0
libtpu: 0.0.40
codegen_flags: <defaults>
</compile_context>

<pallas_src>
import functools

import jax
import jax.numpy as jnp
from jax.experimental import pallas as pl
from jax.experimental.pallas import tpu as pltpu


_INV_SQRT2 = 0.7071067811865476


def _gelu_exact(x):
    # torch.nn.GELU() default = exact erf-based GELU (kept exact for parity).
    # (tanh-approximate GELU would move work to the EUP slot but changes numerics.)
    return 0.5 * x * (1.0 + jax.lax.erf(x * _INV_SQRT2))


def _round_up(n, m):
    return ((n + m - 1) // m) * m


def _pad2(a, rows, cols):
    pr, pc = rows - a.shape[0], cols - a.shape[1]
    if pr == 0 and pc == 0:
        return a
    return jnp.pad(a, ((0, pr), (0, pc)))


def _choose_block_b(batch):
    """Batch tile: fill the MXU M dimension, keep >=2 grid steps for v7x when possible."""
    bp = _round_up(max(int(batch), 1), 8)
    if bp <= 128:
        return int(bp)                       # one step; too small to split usefully
    if bp <= 512:
        return int(min(256, _round_up((bp + 1) // 2, 8)))   # exactly 2 steps
    return 256


_VMEM_CAP_CACHE = None


def _vmem_cap_bytes():
    """~75% of physical VMEM (96 MiB on v5e/v6e, 48 MiB on v7x); conservative default."""
    global _VMEM_CAP_CACHE
    if _VMEM_CAP_CACHE is None:
        physical = 64 * 1024 * 1024          # conservative default (v7x-sized)
        try:
            info = pltpu.get_tpu_info()
            cap = getattr(info, "vmem_capacity_bytes", None)
            if cap:
                physical = int(cap)
        except Exception:
            pass
        _VMEM_CAP_CACHE = int(physical * 3 // 4)
    return _VMEM_CAP_CACHE


# ----------------------------------------------------------------------------------
# Kernel
# ----------------------------------------------------------------------------------
def _classifier_kernel(
    gates_ref,                            # SMEM (4,)  : sigmoid(alpha), softmax(beta_1..3)
    x_ref,                                # VMEM (TB, Hp): CLS-token hidden state (compute dtype)
    wh_ref, bh_ref,                       # hidden Linear        (Hp, Hp),  (1, Hp)
    wc1_ref, bc1_ref,                     # classifier_level_1   (Hp, N1p), (1, N1p)
    wi1a_ref, bi1a_ref,                   # increase_dims_1[0]   (N1p, Hhp),(1, Hhp)
    wi1b_ref, bi1b_ref,                   # increase_dims_1[2]   (Hhp, Hp), (1, Hp)
    wc2_ref, bc2_ref,                     # classifier_level_2   (Hp, N2p), (1, N2p)
    wi2a_ref, bi2a_ref,                   # increase_dims_2[0]   (N2p, Hhp),(1, Hhp)
    wi2b_ref, bi2b_ref,                   # increase_dims_2[2]   (Hhp, Hp), (1, Hp)
    wc3_ref, bc3_ref,                     # classifier_level_3   (Hp, N3p), (1, N3p)
    out_ref,                              # VMEM (TB, N1p+N2p+N3p) f32, one lane-dense slab
):
    f32 = jnp.float32
    cdt = wh_ref.dtype                    # MXU compute dtype (bf16 by default)
    n1p = wc1_ref.shape[1]
    n2p = wc2_ref.shape[1]

    x = x_ref[...]

    # intermediate_output = self.hidden(cls)   (f32 accumulate, f32 elementwise)
    h = jnp.dot(x, wh_ref[...], preferred_element_type=f32) + bh_ref[...]
    # TODO(synk): dropout(p=0.5) treated as inference-mode identity (no RNG mask applied).

    # output_1 = classifier_level_1(intermediate_output)
    out1 = jnp.dot(h.astype(cdt), wc1_ref[...], preferred_element_type=f32) + bc1_ref[...]
    out_ref[:, :n1p] = out1

    # increased_output_1 = increase_dimensions_1(output_1)
    t1 = _gelu_exact(jnp.dot(out1.astype(cdt), wi1a_ref[...],
                             preferred_element_type=f32) + bi1a_ref[...])
    inc1 = _gelu_exact(jnp.dot(t1.astype(cdt), wi1b_ref[...],
                               preferred_element_type=f32) + bi1b_ref[...])

    # alpha-gated residual mix (alpha precomputed in the wrapper)
    alpha = gates_ref[0]
    comb2 = alpha * inc1 + (1.0 - alpha) * h

    # output_2 = classifier_level_2(combined_input_2)
    out2 = jnp.dot(comb2.astype(cdt), wc2_ref[...], preferred_element_type=f32) + bc2_ref[...]
    out_ref[:, n1p:n1p + n2p] = out2

    # increased_output_2 = increase_dimensions_2(output_2)
    t2 = _gelu_exact(jnp.dot(out2.astype(cdt), wi2a_ref[...],
                             preferred_element_type=f32) + bi2a_ref[...])
    inc2 = _gelu_exact(jnp.dot(t2.astype(cdt), wi2b_ref[...],
                               preferred_element_type=f32) + bi2b_ref[...])

    # beta-weighted sum (softmax(betas) precomputed in the wrapper)
    comb3 = gates_ref[1] * inc1 + gates_ref[2] * inc2 + gates_ref[3] * h

    # output_3 = classifier_level_3(combined_input_3)
    out3 = jnp.dot(comb3.astype(cdt), wc3_ref[...], preferred_element_type=f32) + bc3_ref[...]
    out_ref[:, n1p + n2p:] = out3


# ----------------------------------------------------------------------------------
# One-time parameter preparation (hoisted out of the per-call path)
# ----------------------------------------------------------------------------------
def prepare_classifier_params(params_raw, weights, compute_dtype=jnp.bfloat16):
    """Pad weights to the (8,128) grain, cast matmul weights to the MXU dtype, and
    fold the sigmoid/softmax gating parameters.  Call once; reuse per forward."""
    f32 = jnp.float32
    cdt = jnp.dtype(compute_dtype)

    H = weights["wh"].shape[0]
    Hh = weights["wi1a"].shape[1]
    N1 = weights["wc1"].shape[1]
    N2 = weights["wc2"].shape[1]
    N3 = weights["wc3"].shape[1]

    Hp, Hhp = _round_up(H, 128), _round_up(Hh, 128)
    N1p, N2p, N3p = (_round_up(n, 128) for n in (N1, N2, N3))

    def pw(w, rows, cols):
        return _pad2(jnp.asarray(w, f32).astype(cdt), rows, cols)

    def pb(b, cols):
        return _pad2(jnp.asarray(b, f32).reshape(1, -1), 1, cols)

    alpha = jax.nn.sigmoid(params_raw[0])
    betas = jax.nn.softmax(params_raw[1:4])
    gates = jnp.concatenate([alpha[None], betas]).astype(f32)           # (4,)

    padded = (
        pw(weights["wh"], Hp, Hp), pb(weights["bh"], Hp),
        pw(weights["wc1"], Hp, N1p), pb(weights["bc1"], N1p),
        pw(weights["wi1a"], N1p, Hhp), pb(weights["bi1a"], Hhp),
        pw(weights["wi1b"], Hhp, Hp), pb(weights["bi1b"], Hp),
        pw(weights["wc2"], Hp, N2p), pb(weights["bc2"], N2p),
        pw(weights["wi2a"], N2p, Hhp), pb(weights["bi2a"], Hhp),
        pw(weights["wi2b"], Hhp, Hp), pb(weights["bi2b"], Hp),
        pw(weights["wc3"], Hp, N3p), pb(weights["bc3"], N3p),
    )
    dims = {"N1": int(N1), "N2": int(N2), "N3": int(N3)}
    return gates, padded, dims


# ----------------------------------------------------------------------------------
# Jitted forward (activations only in the hot path)
# ----------------------------------------------------------------------------------
@functools.partial(
    jax.jit,
    static_argnames=("n1", "n2", "n3", "block_b", "vmem_cap", "weight_buffers"))
def _forward(x_cls, gates,
             wh, bh, wc1, bc1, wi1a, bi1a, wi1b, bi1b,
             wc2, bc2, wi2a, bi2a, wi2b, bi2b, wc3, bc3,
             *, n1, n2, n3, block_b, vmem_cap, weight_buffers):
    f32 = jnp.float32
    cdt = wh.dtype
    B, H = x_cls.shape
    Hp = wh.shape[0]
    Hhp = wi1a.shape[1]
    N1p, N2p, N3p = wc1.shape[1], wc2.shape[1], wc3.shape[1]
    Ntot = N1p + N2p + N3p

    Bp = _round_up(max(B, 1), block_b)
    grid = (Bp // block_b,)

    # CLS slice already done by the caller; just cast + pad the (B, H) activations.
    x = x_cls.astype(cdt)
    if Bp != B or Hp != H:
        x = jnp.pad(x, ((0, Bp - B), (0, Hp - H)))

    # --- specs ----------------------------------------------------------------------
    smem_spec = pl.BlockSpec(memory_space=pltpu.MemorySpace.SMEM)
    x_spec = pl.BlockSpec((block_b, Hp), lambda i: (i, 0))
    out_spec = pl.BlockSpec((block_b, Ntot), lambda i: (i, 0))          # lane-dense slab

    def w_spec(rows, cols):                                             # VMEM-resident weights
        if weight_buffers:                  # single-buffer: block index never changes
            return pl.BlockSpec((rows, cols), lambda i: (0, 0),
                                pipeline_mode=pl.Buffered(weight_buffers))
        return pl.BlockSpec((rows, cols), lambda i: (0, 0))

    in_specs = [
        smem_spec,
        x_spec,
        w_spec(Hp, Hp), w_spec(1, Hp),
        w_spec(Hp, N1p), w_spec(1, N1p),
        w_spec(N1p, Hhp), w_spec(1, Hhp),
        w_spec(Hhp, Hp), w_spec(1, Hp),
        w_spec(Hp, N2p), w_spec(1, N2p),
        w_spec(N2p, Hhp), w_spec(1, Hhp),
        w_spec(Hhp, Hp), w_spec(1, Hp),
        w_spec(Hp, N3p), w_spec(1, N3p),
    ]

    # --- cost estimate + VMEM budget --------------------------------------------------
    w_elems = (Hp * Hp + Hp * N1p + N1p * Hhp + Hhp * Hp
               + Hp * N2p + N2p * Hhp + Hhp * Hp + Hp * N3p)
    b_elems = 3 * Hp + 2 * Hhp + N1p + N2p + N3p
    flops = 2 * Bp * w_elems
    transcendentals = Bp * 2 * (Hhp + Hp)                               # 4 erf-GELU layers
    bytes_accessed = (w_elems * cdt.itemsize + b_elems * 4
                      + Bp * Hp * cdt.itemsize + Bp * Ntot * 4)
    cost = pl.CostEstimate(flops=flops, transcendentals=transcendentals,
                           bytes_accessed=bytes_accessed)

    wbuf = weight_buffers if weight_buffers else 2                      # actual buffer count
    vmem_need = (wbuf * (w_elems * cdt.itemsize + b_elems * 4)          # resident weights/biases
                 + 2 * block_b * Hp * cdt.itemsize                      # double-buffered input
                 + 2 * block_b * Ntot * 4                               # double-buffered output
                 + 10 * block_b * Hp * 4 + 2 * block_b * Hhp * 4)       # live f32 intermediates
    vmem_limit = min(vmem_cap, max(32 * 1024 * 1024, int(1.5 * vmem_need)))

    out = pl.pallas_call(
        _classifier_kernel,
        out_shape=jax.ShapeDtypeStruct((Bp, Ntot), f32),
        grid=grid,
        in_specs=in_specs,
        out_specs=out_spec,
        compiler_params=pltpu.CompilerParams(
            dimension_semantics=("parallel",),
            vmem_limit_bytes=vmem_limit,
        ),
        cost_estimate=cost,
    )(gates, x, wh, bh, wc1, bc1, wi1a, bi1a, wi1b, bi1b,
      wc2, bc2, wi2a, bi2a, wi2b, bi2b, wc3, bc3)

    # Split the padded slab back into the three true logit blocks.
    o1 = out[:B, :n1]
    o2 = out[:B, N1p:N1p + n2]
    o3 = out[:B, N1p + N2p:N1p + N2p + n3]
    return o1, o2, o3


def multi_iddr_classifier_wsum(last_hidden_state, prepared):
    """last_hidden_state: (B, S, H) f32; prepared: output of prepare_classifier_params."""
    gates, padded, dims = prepared
    x_cls = last_hidden_state[:, 0, :]          # CLS slice BEFORE any cast/pad
    block_b = _choose_block_b(x_cls.shape[0])
    common = dict(n1=dims["N1"], n2=dims["N2"], n3=dims["N3"],
                  block_b=block_b, vmem_cap=_vmem_cap_bytes())
    try:
        o1, o2, o3 = _forward(x_cls, gates, *padded, weight_buffers=1, **common)
    except Exception:
        # Fallback for JAX versions that reject pl.Buffered(1) on pallas_call inputs.
        o1, o2, o3 = _forward(x_cls, gates, *padded, weight_buffers=0, **common)
    return {
        "classifier_level_1": o1,
        "classifier_level_2": o2,
        "classifier_level_3": o3,
    }


# ----------------------------------------------------------------------------------
# Synthetic init + pure-JAX reference
# ----------------------------------------------------------------------------------
def _init_params(key, H, N1, N2, N3):
    """Deterministic synthetic parameter init (shapes from the torch module's __init__)."""
    ks = jax.random.split(key, 8)

    def lin(k, fan_in, fan_out):
        w = jax.random.normal(k, (fan_in, fan_out), jnp.float32) * (1.0 / jnp.sqrt(fan_in))
        b = jnp.full((1, fan_out), 0.01, jnp.float32)
        return w, b

    wh, bh = lin(ks[0], H, H)
    wc1, bc1 = lin(ks[1], H, N1)
    wi1a, bi1a = lin(ks[2], N1, H // 2)
    wi1b, bi1b = lin(ks[3], H // 2, H)
    wc2, bc2 = lin(ks[4], H, N2)
    wi2a, bi2a = lin(ks[5], N2, H // 2)
    wi2b, bi2b = lin(ks[6], H // 2, H)
    wc3, bc3 = lin(ks[7], H, N3)

    weights = dict(
        wh=wh, bh=bh, wc1=wc1, bc1=bc1, wi1a=wi1a, bi1a=bi1a, wi1b=wi1b, bi1b=bi1b,
        wc2=wc2, bc2=bc2, wi2a=wi2a, bi2a=bi2a, wi2b=wi2b, bi2b=bi2b, wc3=wc3, bc3=bc3,
    )
    # alpha_param=0.5, beta_1=0.25, beta_2=0.25, beta_3=0.5 (raw, pre-activation)
    params_raw = jnp.array([0.5, 0.25, 0.25, 0.5], jnp.float32)
    return params_raw, weights


def _reference(last_hidden_state, params_raw, w, compute_dtype=jnp.bfloat16):
    """Pure-JAX reference of the same forward pass with matching dot-operand casts."""
    f32 = jnp.float32
    cdt = jnp.dtype(compute_dtype)

    def dot(a, b):
        return jnp.dot(a.astype(cdt), b.astype(cdt), preferred_element_type=f32)

    gelu = lambda v: 0.5 * v * (1.0 + jax.lax.erf(v * _INV_SQRT2))
    x = last_hidden_state[:, 0]
    h = dot(x, w["wh"]) + w["bh"]
    o1 = dot(h, w["wc1"]) + w["bc1"]
    inc1 = gelu(dot(gelu(dot(o1, w["wi1a"]) + w["bi1a"]), w["wi1b"]) + w["bi1b"])
    alpha = jax.nn.sigmoid(params_raw[0])
    c2 = alpha * inc1 + (1 - alpha) * h
    o2 = dot(c2, w["wc2"]) + w["bc2"]
    inc2 = gelu(dot(gelu(dot(o2, w["wi2a"]) + w["bi2a"]), w["wi2b"]) + w["bi2b"])
    betas = jax.nn.softmax(params_raw[1:4])
    c3 = betas[0] * inc1 + betas[1] * inc2 + betas[2] * h
    o3 = dot(c3, w["wc3"]) + w["bc3"]
    return o1, o2, o3


if __name__ == "__main__":
    # Small synthetic shapes: batch=4, seq=8, hidden=32, senses = {16, 24, 36}
    B, S, H = 4, 8, 32
    N1, N2, N3 = 16, 24, 36

    key = jax.random.PRNGKey(0)
    k_x, k_p = jax.random.split(key)
    last_hidden_state = jax.random.normal(k_x, (B, S, H), jnp.float32)
    params_raw, weights = _init_params(k_p, H, N1, N2, N3)

    # One-time weight padding / casting + gate folding (hoisted out of the hot path).
    prepared = prepare_classifier_params(params_raw, weights)

    logits = multi_iddr_classifier_wsum(last_hidden_state, prepared)
    jax.block_until_ready(logits)

    assert logits["classifier_level_1"].shape == (B, N1)
    assert logits["classifier_level_2"].shape == (B, N2)
    assert logits["classifier_level_3"].shape == (B, N3)

    # sanity check against pure-JAX reference (same bf16 dot-operand rounding)
    r1, r2, r3 = _reference(last_hidden_state, params_raw, weights)
    assert jnp.allclose(logits["classifier_level_1"], r1, atol=1e-2, rtol=1e-2)
    assert jnp.allclose(logits["classifier_level_2"], r2, atol=1e-2, rtol=1e-2)
    assert jnp.allclose(logits["classifier_level_3"], r3, atol=1e-2, rtol=1e-2)

    print("KERNEL_OK")
</pallas_src>

<mosaic_0001>
module attributes {stable_mosaic.version = 11 : i64} {
  func.func @_classifier_kernel(%arg0: i32, %arg1: memref<4xf32, #tpu.memory_space<smem>>, %arg2: memref<8x128xbf16, #tpu.memory_space<vmem>>, %arg3: memref<128x128xbf16, #tpu.memory_space<vmem>>, %arg4: memref<1x128xf32, #tpu.memory_space<vmem>>, %arg5: memref<128x128xbf16, #tpu.memory_space<vmem>>, %arg6: memref<1x128xf32, #tpu.memory_space<vmem>>, %arg7: memref<128x128xbf16, #tpu.memory_space<vmem>>, %arg8: memref<1x128xf32, #tpu.memory_space<vmem>>, %arg9: memref<128x128xbf16, #tpu.memory_space<vmem>>, %arg10: memref<1x128xf32, #tpu.memory_space<vmem>>, %arg11: memref<128x128xbf16, #tpu.memory_space<vmem>>, %arg12: memref<1x128xf32, #tpu.memory_space<vmem>>, %arg13: memref<128x128xbf16, #tpu.memory_space<vmem>>, %arg14: memref<1x128xf32, #tpu.memory_space<vmem>>, %arg15: memref<128x128xbf16, #tpu.memory_space<vmem>>, %arg16: memref<1x128xf32, #tpu.memory_space<vmem>>, %arg17: memref<128x128xbf16, #tpu.memory_space<vmem>>, %arg18: memref<1x128xf32, #tpu.memory_space<vmem>>, %arg19: memref<8x384xf32, #tpu.memory_space<vmem>>) attributes {dimension_semantics = [#tpu.dimension_semantics<parallel>], iteration_bounds = array<i64: 1>, scalar_prefetch = 0 : i64, scratch_operands = 0 : i64, tpu.core_type = #tpu.core_type<tc>, window_params = [{transform_indices = @transform_0, window_bounds = array<i64: 4>}, {transform_indices = @transform_1, window_bounds = array<i64: 8, 128>}, {pipeline_mode = #tpu.pipeline_mode<synchronous>, transform_indices = @transform_2, window_bounds = array<i64: 128, 128>}, {pipeline_mode = #tpu.pipeline_mode<synchronous>, transform_indices = @transform_3, window_bounds = array<i64: 1, 128>}, {pipeline_mode = #tpu.pipeline_mode<synchronous>, transform_indices = @transform_4, window_bounds = array<i64: 128, 128>}, {pipeline_mode = #tpu.pipeline_mode<synchronous>, transform_indices = @transform_5, window_bounds = array<i64: 1, 128>}, {pipeline_mode = #tpu.pipeline_mode<synchronous>, transform_indices = @transform_6, window_bounds = array<i64: 128, 128>}, {pipeline_mode = #tpu.pipeline_mode<synchronous>, transform_indices = @transform_7, window_bounds = array<i64: 1, 128>}, {pipeline_mode = #tpu.pipeline_mode<synchronous>, transform_indices = @transform_8, window_bounds = array<i64: 128, 128>}, {pipeline_mode = #tpu.pipeline_mode<synchronous>, transform_indices = @transform_9, window_bounds = array<i64: 1, 128>}, {pipeline_mode = #tpu.pipeline_mode<synchronous>, transform_indices = @transform_10, window_bounds = array<i64: 128, 128>}, {pipeline_mode = #tpu.pipeline_mode<synchronous>, transform_indices = @transform_11, window_bounds = array<i64: 1, 128>}, {pipeline_mode = #tpu.pipeline_mode<synchronous>, transform_indices = @transform_12, window_bounds = array<i64: 128, 128>}, {pipeline_mode = #tpu.pipeline_mode<synchronous>, transform_indices = @transform_13, window_bounds = array<i64: 1, 128>}, {pipeline_mode = #tpu.pipeline_mode<synchronous>, transform_indices = @transform_14, window_bounds = array<i64: 128, 128>}, {pipeline_mode = #tpu.pipeline_mode<synchronous>, transform_indices = @transform_15, window_bounds = array<i64: 1, 128>}, {pipeline_mode = #tpu.pipeline_mode<synchronous>, transform_indices = @transform_16, window_bounds = array<i64: 128, 128>}, {pipeline_mode = #tpu.pipeline_mode<synchronous>, transform_indices = @transform_17, window_bounds = array<i64: 1, 128>}, {transform_indices = @transform_18, window_bounds = array<i64: 8, 384>}]} {
    %c0 = arith.constant 0 : index
    %c0_0 = arith.constant 0 : index
    %0 = vector.load %arg2[%c0, %c0_0] : memref<8x128xbf16, #tpu.memory_space<vmem>>, vector<8x128xbf16>
    %c0_1 = arith.constant 0 : index
    %c0_2 = arith.constant 0 : index
    %1 = vector.load %arg3[%c0_1, %c0_2] : memref<128x128xbf16, #tpu.memory_space<vmem>>, vector<128x128xbf16>
    %cst = arith.constant dense<0.000000e+00> : vector<8x128xf32>
    %2 = tpu.matmul %0, %1, %cst {dimension_numbers = #tpu.dot_dimension_numbers<[1], [0], [0], [1], [0, 0, 1, 1], [], []>} : vector<8x128xbf16>, vector<128x128xbf16>, vector<8x128xf32> -> vector<8x128xf32>
    %c0_3 = arith.constant 0 : index
    %c0_4 = arith.constant 0 : index
    %3 = vector.load %arg4[%c0_3, %c0_4] : memref<1x128xf32, #tpu.memory_space<vmem>>, vector<1x128xf32>
    %4 = vector.broadcast %3 : vector<1x128xf32> to vector<8x128xf32>
    %5 = arith.addf %2, %4 : vector<8x128xf32>
    %6 = arith.truncf %5 : vector<8x128xf32> to vector<8x128xbf16>
    %c0_5 = arith.constant 0 : index
    %c0_6 = arith.constant 0 : index
    %7 = vector.load %arg5[%c0_5, %c0_6] : memref<128x128xbf16, #tpu.memory_space<vmem>>, vector<128x128xbf16>
    %cst_7 = arith.constant dense<0.000000e+00> : vector<8x128xf32>
    %8 = tpu.matmul %6, %7, %cst_7 {dimension_numbers = #tpu.dot_dimension_numbers<[1], [0], [0], [1], [0, 0, 1, 1], [], []>} : vector<8x128xbf16>, vector<128x128xbf16>, vector<8x128xf32> -> vector<8x128xf32>
    %c0_8 = arith.constant 0 : index
    %c0_9 = arith.constant 0 : index
    %9 = vector.load %arg6[%c0_8, %c0_9] : memref<1x128xf32, #tpu.memory_space<vmem>>, vector<1x128xf32>
    %10 = vector.broadcast %9 : vector<1x128xf32> to vector<8x128xf32>
    %11 = arith.addf %8, %10 : vector<8x128xf32>
    %c0_10 = arith.constant 0 : index
    %c0_11 = arith.constant 0 : index
    %12 = vector.load %arg19[%c0_10, %c0_11] : memref<8x384xf32, #tpu.memory_space<vmem>>, vector<8x128xf32>
    tpu.vector_store %arg19[%c0_10, %c0_11], %11 {strides = array<i32>} : memref<8x384xf32, #tpu.memory_space<vmem>>, vector<8x128xf32>,
    %13 = arith.truncf %11 : vector<8x128xf32> to vector<8x128xbf16>
    %c0_12 = arith.constant 0 : index
    %c0_13 = arith.constant 0 : index
    %14 = vector.load %arg7[%c0_12, %c0_13] : memref<128x128xbf16, #tpu.memory_space<vmem>>, vector<128x128xbf16>
    %cst_14 = arith.constant dense<0.000000e+00> : vector<8x128xf32>
    %15 = tpu.matmul %13, %14, %cst_14 {dimension_numbers = #tpu.dot_dimension_numbers<[1], [0], [0], [1], [0, 0, 1, 1], [], []>} : vector<8x128xbf16>, vector<128x128xbf16>, vector<8x128xf32> -> vector<8x128xf32>
    %c0_15 = arith.constant 0 : index
    %c0_16 = arith.constant 0 : index
    %16 = vector.load %arg8[%c0_15, %c0_16] : memref<1x128xf32, #tpu.memory_space<vmem>>, vector<1x128xf32>
    %17 = vector.broadcast %16 : vector<1x128xf32> to vector<8x128xf32>
    %18 = arith.addf %15, %17 : vector<8x128xf32>
    %cst_17 = arith.constant 5.000000e-01 : f32
    %19 = vector.broadcast %cst_17 : f32 to vector<8x128xf32>
    %20 = arith.mulf %19, %18 : vector<8x128xf32>
    %cst_18 = arith.constant 0.707106769 : f32
    %21 = vector.broadcast %cst_18 : f32 to vector<8x128xf32>
    %22 = arith.mulf %18, %21 : vector<8x128xf32>
    %23 = math.erf %22 : vector<8x128xf32>
    %cst_19 = arith.constant 1.000000e+00 : f32
    %24 = vector.broadcast %cst_19 : f32 to vector<8x128xf32>
    %25 = arith.addf %24, %23 : vector<8x128xf32>
    %26 = arith.mulf %20, %25 : vector<8x128xf32>
    %27 = arith.truncf %26 : vector<8x128xf32> to vector<8x128xbf16>
    %c0_20 = arith.constant 0 : index
    %c0_21 = arith.constant 0 : index
    %28 = vector.load %arg9[%c0_20, %c0_21] : memref<128x128xbf16, #tpu.memory_space<vmem>>, vector<128x128xbf16>
    %cst_22 = arith.constant dense<0.000000e+00> : vector<8x128xf32>
    %29 = tpu.matmul %27, %28, %cst_22 {dimension_numbers = #tpu.dot_dimension_numbers<[1], [0], [0], [1], [0, 0, 1, 1], [], []>} : vector<8x128xbf16>, vector<128x128xbf16>, vector<8x128xf32> -> vector<8x128xf32>
    %c0_23 = arith.constant 0 : index
    %c0_24 = arith.constant 0 : index
    %30 = vector.load %arg10[%c0_23, %c0_24] : memref<1x128xf32, #tpu.memory_space<vmem>>, vector<1x128xf32>
    %31 = vector.broadcast %30 : vector<1x128xf32> to vector<8x128xf32>
    %32 = arith.addf %29, %31 : vector<8x128xf32>
    %cst_25 = arith.constant 5.000000e-01 : f32
    %33 = vector.broadcast %cst_25 : f32 to vector<8x128xf32>
    %34 = arith.mulf %33, %32 : vector<8x128xf32>
    %cst_26 = arith.constant 0.707106769 : f32
    %35 = vector.broadcast %cst_26 : f32 to vector<8x128xf32>
    %36 = arith.mulf %32, %35 : vector<8x128xf32>
    %37 = math.erf %36 : vector<8x128xf32>
    %cst_27 = arith.constant 1.000000e+00 : f32
    %38 = vector.broadcast %cst_27 : f32 to vector<8x128xf32>
    %39 = arith.addf %38, %37 : vector<8x128xf32>
    %40 = arith.mulf %34, %39 : vector<8x128xf32>
    %c0_28 = arith.constant 0 : index
    %41 = memref.load %arg1[%c0_28] : memref<4xf32, #tpu.memory_space<smem>>
    %42 = vector.broadcast %41 : f32 to vector<8x128xf32>
    %43 = arith.mulf %42, %40 : vector<8x128xf32>
    %cst_29 = arith.constant 1.000000e+00 : f32
    %44 = arith.subf %cst_29, %41 : f32
    %45 = vector.broadcast %44 : f32 to vector<8x128xf32>
    %46 = arith.mulf %45, %5 : vector<8x128xf32>
    %47 = arith.addf %43, %46 : vector<8x128xf32>
    %48 = arith.truncf %47 : vector<8x128xf32> to vector<8x128xbf16>
    %c0_30 = arith.constant 0 : index
    %c0_31 = arith.constant 0 : index
    %49 = vector.load %arg11[%c0_30, %c0_31] : memref<128x128xbf16, #tpu.memory_space<vmem>>, vector<128x128xbf16>
    %cst_32 = arith.constant dense<0.000000e+00> : vector<8x128xf32>
    %50 = tpu.matmul %48, %49, %cst_32 {dimension_numbers = #tpu.dot_dimension_numbers<[1], [0], [0], [1], [0, 0, 1, 1], [], []>} : vector<8x128xbf16>, vector<128x128xbf16>, vector<8x128xf32> -> vector<8x128xf32>
    %c0_33 = arith.constant 0 : index
    %c0_34 = arith.constant 0 : index
    %51 = vector.load %arg12[%c0_33, %c0_34] : memref<1x128xf32, #tpu.memory_space<vmem>>, vector<1x128xf32>
    %52 = vector.broadcast %51 : vector<1x128xf32> to vector<8x128xf32>
    %53 = arith.addf %50, %52 : vector<8x128xf32>
    %c0_35 = arith.constant 0 : index
    %c128 = arith.constant 128 : index
    %54 = vector.load %arg19[%c0_35, %c128] : memref<8x384xf32, #tpu.memory_space<vmem>>, vector<8x128xf32>
    tpu.vector_store %arg19[%c0_35, %c128], %53 {strides = array<i32>} : memref<8x384xf32, #tpu.memory_space<vmem>>, vector<8x128xf32>,
    %55 = arith.truncf %53 : vector<8x128xf32> to vector<8x128xbf16>
    %c0_36 = arith.constant 0 : index
    %c0_37 = arith.constant 0 : index
    %56 = vector.load %arg13[%c0_36, %c0_37] : memref<128x128xbf16, #tpu.memory_space<vmem>>, vector<128x128xbf16>
    %cst_38 = arith.constant dense<0.000000e+00> : vector<8x128xf32>
    %57 = tpu.matmul %55, %56, %cst_38 {dimension_numbers = #tpu.dot_dimension_numbers<[1], [0], [0], [1], [0, 0, 1, 1], [], []>} : vector<8x128xbf16>, vector<128x128xbf16>, vector<8x128xf32> -> vector<8x128xf32>
    %c0_39 = arith.constant 0 : index
    %c0_40 = arith.constant 0 : index
    %58 = vector.load %arg14[%c0_39, %c0_40] : memref<1x128xf32, #tpu.memory_space<vmem>>, vector<1x128xf32>
    %59 = vector.broadcast %58 : vector<1x128xf32> to vector<8x128xf32>
    %60 = arith.addf %57, %59 : vector<8x128xf32>
    %cst_41 = arith.constant 5.000000e-01 : f32
    %61 = vector.broadcast %cst_41 : f32 to vector<8x128xf32>
    %62 = arith.mulf %61, %60 : vector<8x128xf32>
    %cst_42 = arith.constant 0.707106769 : f32
    %63 = vector.broadcast %cst_42 : f32 to vector<8x128xf32>
    %64 = arith.mulf %60, %63 : vector<8x128xf32>
    %65 = math.erf %64 : vector<8x128xf32>
    %cst_43 = arith.constant 1.000000e+00 : f32
    %66 = vector.broadcast %cst_43 : f32 to vector<8x128xf32>
    %67 = arith.addf %66, %65 : vector<8x128xf32>
    %68 = arith.mulf %62, %67 : vector<8x128xf32>
    %69 = arith.truncf %68 : vector<8x128xf32> to vector<8x128xbf16>
    %c0_44 = arith.constant 0 : index
    %c0_45 = arith.constant 0 : index
    %70 = vector.load %arg15[%c0_44, %c0_45] : memref<128x128xbf16, #tpu.memory_space<vmem>>, vector<128x128xbf16>
    %cst_46 = arith.constant dense<0.000000e+00> : vector<8x128xf32>
    %71 = tpu.matmul %69, %70, %cst_46 {dimension_numbers = #tpu.dot_dimension_numbers<[1], [0], [0], [1], [0, 0, 1, 1], [], []>} : vector<8x128xbf16>, vector<128x128xbf16>, vector<8x128xf32> -> vector<8x128xf32>
    %c0_47 = arith.constant 0 : index
    %c0_48 = arith.constant 0 : index
    %72 = vector.load %arg16[%c0_47, %c0_48] : memref<1x128xf32, #tpu.memory_space<vmem>>, vector<1x128xf32>
    %73 = vector.broadcast %72 : vector<1x128xf32> to vector<8x128xf32>
    %74 = arith.addf %71, %73 : vector<8x128xf32>
    %cst_49 = arith.constant 5.000000e-01 : f32
    %75 = vector.broadcast %cst_49 : f32 to vector<8x128xf32>
    %76 = arith.mulf %75, %74 : vector<8x128xf32>
    %cst_50 = arith.constant 0.707106769 : f32
    %77 = vector.broadcast %cst_50 : f32 to vector<8x128xf32>
    %78 = arith.mulf %74, %77 : vector<8x128xf32>
    %79 = math.erf %78 : vector<8x128xf32>
    %cst_51 = arith.constant 1.000000e+00 : f32
    %80 = vector.broadcast %cst_51 : f32 to vector<8x128xf32>
    %81 = arith.addf %80, %79 : vector<8x128xf32>
    %82 = arith.mulf %76, %81 : vector<8x128xf32>
    %c1 = arith.constant 1 : index
    %83 = memref.load %arg1[%c1] : memref<4xf32, #tpu.memory_space<smem>>
    %84 = vector.broadcast %83 : f32 to vector<8x128xf32>
    %85 = arith.mulf %84, %40 : vector<8x128xf32>
    %c2 = arith.constant 2 : index
    %86 = memref.load %arg1[%c2] : memref<4xf32, #tpu.memory_space<smem>>
    %87 = vector.broadcast %86 : f32 to vector<8x128xf32>
    %88 = arith.mulf %87, %82 : vector<8x128xf32>
    %89 = arith.addf %85, %88 : vector<8x128xf32>
    %c3 = arith.constant 3 : index
    %90 = memref.load %arg1[%c3] : memref<4xf32, #tpu.memory_space<smem>>
    %91 = vector.broadcast %90 : f32 to vector<8x128xf32>
    %92 = arith.mulf %91, %5 : vector<8x128xf32>
    %93 = arith.addf %89, %92 : vector<8x128xf32>
    %94 = arith.truncf %93 : vector<8x128xf32> to vector<8x128xbf16>
    %c0_52 = arith.constant 0 : index
    %c0_53 = arith.constant 0 : index
    %95 = vector.load %arg17[%c0_52, %c0_53] : memref<128x128xbf16, #tpu.memory_space<vmem>>, vector<128x128xbf16>
    %cst_54 = arith.constant dense<0.000000e+00> : vector<8x128xf32>
    %96 = tpu.matmul %94, %95, %cst_54 {dimension_numbers = #tpu.dot_dimension_numbers<[1], [0], [0], [1], [0, 0, 1, 1], [], []>} : vector<8x128xbf16>, vector<128x128xbf16>, vector<8x128xf32> -> vector<8x128xf32>
    %c0_55 = arith.constant 0 : index
    %c0_56 = arith.constant 0 : index
    %97 = vector.load %arg18[%c0_55, %c0_56] : memref<1x128xf32, #tpu.memory_space<vmem>>, vector<1x128xf32>
    %98 = vector.broadcast %97 : vector<1x128xf32> to vector<8x128xf32>
    %99 = arith.addf %96, %98 : vector<8x128xf32>
    %c0_57 = arith.constant 0 : index
    %c256 = arith.constant 256 : index
    %100 = vector.load %arg19[%c0_57, %c256] : memref<8x384xf32, #tpu.memory_space<vmem>>, vector<8x128xf32>
    tpu.vector_store %arg19[%c0_57, %c256], %99 {strides = array<i32>} : memref<8x384xf32, #tpu.memory_space<vmem>>, vector<8x128xf32>,
    return
  }
  func.func @transform_0(%arg0: i32) -> i32 {
    %c0_i32 = arith.constant 0 : i32
    %c0_i32_0 = arith.constant 0 : i32
    return %c0_i32 : i32
  }
  func.func @transform_1(%arg0: i32) -> (i32, i32) {
    %c0_i32 = arith.constant 0 : i32
    %c0_i32_0 = arith.constant 0 : i32
    return %arg0, %c0_i32 : i32, i32
  }
  func.func @transform_2(%arg0: i32) -> (i32, i32) {
    %c0_i32 = arith.constant 0 : i32
    %c0_i32_0 = arith.constant 0 : i32
    %c0_i32_1 = arith.constant 0 : i32
    return %c0_i32, %c0_i32_0 : i32, i32
  }
  func.func @transform_3(%arg0: i32) -> (i32, i32) {
    %c0_i32 = arith.constant 0 : i32
    %c0_i32_0 = arith.constant 0 : i32
    %c0_i32_1 = arith.constant 0 : i32
    return %c0_i32, %c0_i32_0 : i32, i32
  }
  func.func @transform_4(%arg0: i32) -> (i32, i32) {
    %c0_i32 = arith.constant 0 : i32
    %c0_i32_0 = arith.constant 0 : i32
    %c0_i32_1 = arith.constant 0 : i32
    return %c0_i32, %c0_i32_0 : i32, i32
  }
  func.func @transform_5(%arg0: i32) -> (i32, i32) {
    %c0_i32 = arith.constant 0 : i32
    %c0_i32_0 = arith.constant 0 : i32
    %c0_i32_1 = arith.constant 0 : i32
    return %c0_i32, %c0_i32_0 : i32, i32
  }
  func.func @transform_6(%arg0: i32) -> (i32, i32) {
    %c0_i32 = arith.constant 0 : i32
    %c0_i32_0 = arith.constant 0 : i32
    %c0_i32_1 = arith.constant 0 : i32
    return %c0_i32, %c0_i32_0 : i32, i32
  }
  func.func @transform_7(%arg0: i32) -> (i32, i32) {
    %c0_i32 = arith.constant 0 : i32
    %c0_i32_0 = arith.constant 0 : i32
    %c0_i32_1 = arith.constant 0 : i32
    return %c0_i32, %c0_i32_0 : i32, i32
  }
  func.func @transform_8(%arg0: i32) -> (i32, i32) {
    %c0_i32 = arith.constant 0 : i32
    %c0_i32_0 = arith.constant 0 : i32
    %c0_i32_1 = arith.constant 0 : i32
    return %c0_i32, %c0_i32_0 : i32, i32
  }
  func.func @transform_9(%arg0: i32) -> (i32, i32) {
    %c0_i32 = arith.constant 0 : i32
    %c0_i32_0 = arith.constant 0 : i32
    %c0_i32_1 = arith.constant 0 : i32
    return %c0_i32, %c0_i32_0 : i32, i32
  }
  func.func @transform_10(%arg0: i32) -> (i32, i32) {
    %c0_i32 = arith.constant 0 : i32
    %c0_i32_0 = arith.constant 0 : i32
    %c0_i32_1 = arith.constant 0 : i32
    return %c0_i32, %c0_i32_0 : i32, i32
  }
  func.func @transform_11(%arg0: i32) -> (i32, i32) {
    %c0_i32 = arith.constant 0 : i32
    %c0_i32_0 = arith.constant 0 : i32
    %c0_i32_1 = arith.constant 0 : i32
    return %c0_i32, %c0_i32_0 : i32, i32
  }
  func.func @transform_12(%arg0: i32) -> (i32, i32) {
    %c0_i32 = arith.constant 0 : i32
    %c0_i32_0 = arith.constant 0 : i32
    %c0_i32_1 = arith.constant 0 : i32
    return %c0_i32, %c0_i32_0 : i32, i32
  }
  func.func @transform_13(%arg0: i32) -> (i32, i32) {
    %c0_i32 = arith.constant 0 : i32
    %c0_i32_0 = arith.constant 0 : i32
    %c0_i32_1 = arith.constant 0 : i32
    return %c0_i32, %c0_i32_0 : i32, i32
  }
  func.func @transform_14(%arg0: i32) -> (i32, i32) {
    %c0_i32 = arith.constant 0 : i32
    %c0_i32_0 = arith.constant 0 : i32
    %c0_i32_1 = arith.constant 0 : i32
    return %c0_i32, %c0_i32_0 : i32, i32
  }
  func.func @transform_15(%arg0: i32) -> (i32, i32) {
    %c0_i32 = arith.constant 0 : i32
    %c0_i32_0 = arith.constant 0 : i32
    %c0_i32_1 = arith.constant 0 : i32
    return %c0_i32, %c0_i32_0 : i32, i32
  }
  func.func @transform_16(%arg0: i32) -> (i32, i32) {
    %c0_i32 = arith.constant 0 : i32
    %c0_i32_0 = arith.constant 0 : i32
    %c0_i32_1 = arith.constant 0 : i32
    return %c0_i32, %c0_i32_0 : i32, i32
  }
  func.func @transform_17(%arg0: i32) -> (i32, i32) {
    %c0_i32 = arith.constant 0 : i32
    %c0_i32_0 = arith.constant 0 : i32
    %c0_i32_1 = arith.constant 0 : i32
    return %c0_i32, %c0_i32_0 : i32, i32
  }
  func.func @transform_18(%arg0: i32) -> (i32, i32) {
    %c0_i32 = arith.constant 0 : i32
    %c0_i32_0 = arith.constant 0 : i32
    return %arg0, %c0_i32 : i32, i32
  }
}

module attributes {stable_mosaic.version = 11 : i64} {
  func.func @_classifier_kernel(%arg0: i32, %arg1: memref<4xf32, #tpu.memory_space<smem>>, %arg2: memref<8x128xbf16, #tpu.memory_space<vmem>>, %arg3: memref<128x128xbf16, #tpu.memory_space<vmem>>, %arg4: memref<1x128xf32, #tpu.memory_space<vmem>>, %arg5: memref<128x128xbf16, #tpu.memory_space<vmem>>, %arg6: memref<1x128xf32, #tpu.memory_space<vmem>>, %arg7: memref<128x128xbf16, #tpu.memory_space<vmem>>, %arg8: memref<1x128xf32, #tpu.memory_space<vmem>>, %arg9: memref<128x128xbf16, #tpu.memory_space<vmem>>, %arg10: memref<1x128xf32, #tpu.memory_space<vmem>>, %arg11: memref<128x128xbf16, #tpu.memory_space<vmem>>, %arg12: memref<1x128xf32, #tpu.memory_space<vmem>>, %arg13: memref<128x128xbf16, #tpu.memory_space<vmem>>, %arg14: memref<1x128xf32, #tpu.memory_space<vmem>>, %arg15: memref<128x128xbf16, #tpu.memory_space<vmem>>, %arg16: memref<1x128xf32, #tpu.memory_space<vmem>>, %arg17: memref<128x128xbf16, #tpu.memory_space<vmem>>, %arg18: memref<1x128xf32, #tpu.memory_space<vmem>>, %arg19: memref<8x384xf32, #tpu.memory_space<vmem>>) attributes {dimension_semantics = [#tpu.dimension_semantics<parallel>], iteration_bounds = array<i64: 1>, scalar_prefetch = 0 : i64, scratch_operands = 0 : i64, tpu.core_type = #tpu.core_type<tc>, window_params = [{transform_indices = @transform_0, window_bounds = array<i64: 4>}, {transform_indices = @transform_1, window_bounds = array<i64: 8, 128>}, {pipeline_mode = #tpu.pipeline_mode<synchronous>, transform_indices = @transform_2, window_bounds = array<i64: 128, 128>}, {pipeline_mode = #tpu.pipeline_mode<synchronous>, transform_indices = @transform_3, window_bounds = array<i64: 1, 128>}, {pipeline_mode = #tpu.pipeline_mode<synchronous>, transform_indices = @transform_4, window_bounds = array<i64: 128, 128>}, {pipeline_mode = #tpu.pipeline_mode<synchronous>, transform_indices = @transform_5, window_bounds = array<i64: 1, 128>}, {pipeline_mode = #tpu.pipeline_mode<synchronous>, transform_indices = @transform_6, window_bounds = array<i64: 128, 128>}, {pipeline_mode = #tpu.pipeline_mode<synchronous>, transform_indices = @transform_7, window_bounds = array<i64: 1, 128>}, {pipeline_mode = #tpu.pipeline_mode<synchronous>, transform_indices = @transform_8, window_bounds = array<i64: 128, 128>}, {pipeline_mode = #tpu.pipeline_mode<synchronous>, transform_indices = @transform_9, window_bounds = array<i64: 1, 128>}, {pipeline_mode = #tpu.pipeline_mode<synchronous>, transform_indices = @transform_10, window_bounds = array<i64: 128, 128>}, {pipeline_mode = #tpu.pipeline_mode<synchronous>, transform_indices = @transform_11, window_bounds = array<i64: 1, 128>}, {pipeline_mode = #tpu.pipeline_mode<synchronous>, transform_indices = @transform_12, window_bounds = array<i64: 128, 128>}, {pipeline_mode = #tpu.pipeline_mode<synchronous>, transform_indices = @transform_13, window_bounds = array<i64: 1, 128>}, {pipeline_mode = #tpu.pipeline_mode<synchronous>, transform_indices = @transform_14, window_bounds = array<i64: 128, 128>}, {pipeline_mode = #tpu.pipeline_mode<synchronous>, transform_indices = @transform_15, window_bounds = array<i64: 1, 128>}, {pipeline_mode = #tpu.pipeline_mode<synchronous>, transform_indices = @transform_16, window_bounds = array<i64: 128, 128>}, {pipeline_mode = #tpu.pipeline_mode<synchronous>, transform_indices = @transform_17, window_bounds = array<i64: 1, 128>}, {transform_indices = @transform_18, window_bounds = array<i64: 8, 384>}]} {
    %c0 = arith.constant 0 : index
    %c0_0 = arith.constant 0 : index
    %0 = vector.load %arg2[%c0, %c0_0] : memref<8x128xbf16, #tpu.memory_space<vmem>>, vector<8x128xbf16>
    %c0_1 = arith.constant 0 : index
    %c0_2 = arith.constant 0 : index
    %1 = vector.load %arg3[%c0_1, %c0_2] : memref<128x128xbf16, #tpu.memory_space<vmem>>, vector<128x128xbf16>
    %cst = arith.constant dense<0.000000e+00> : vector<8x128xf32>
    %2 = tpu.matmul %0, %1, %cst {dimension_numbers = #tpu.dot_dimension_numbers<[1], [0], [0], [1], [0, 0, 1, 1], [], []>} : vector<8x128xbf16>, vector<128x128xbf16>, vector<8x128xf32> -> vector<8x128xf32>
    %c0_3 = arith.constant 0 : index
    %c0_4 = arith.constant 0 : index
    %3 = vector.load %arg4[%c0_3, %c0_4] : memref<1x128xf32, #tpu.memory_space<vmem>>, vector<1x128xf32>
    %4 = vector.broadcast %3 : vector<1x128xf32> to vector<8x128xf32>
    %5 = arith.addf %2, %4 : vector<8x128xf32>
    %6 = arith.truncf %5 : vector<8x128xf32> to vector<8x128xbf16>
    %c0_5 = arith.constant 0 : index
    %c0_6 = arith.constant 0 : index
    %7 = vector.load %arg5[%c0_5, %c0_6] : memref<128x128xbf16, #tpu.memory_space<vmem>>, vector<128x128xbf16>
    %cst_7 = arith.constant dense<0.000000e+00> : vector<8x128xf32>
    %8 = tpu.matmul %6, %7, %cst_7 {dimension_numbers = #tpu.dot_dimension_numbers<[1], [0], [0], [1], [0, 0, 1, 1], [], []>} : vector<8x128xbf16>, vector<128x128xbf16>, vector<8x128xf32> -> vector<8x128xf32>
    %c0_8 = arith.constant 0 : index
    %c0_9 = arith.constant 0 : index
    %9 = vector.load %arg6[%c0_8, %c0_9] : memref<1x128xf32, #tpu.memory_space<vmem>>, vector<1x128xf32>
    %10 = vector.broadcast %9 : vector<1x128xf32> to vector<8x128xf32>
    %11 = arith.addf %8, %10 : vector<8x128xf32>
    %c0_10 = arith.constant 0 : index
    %c0_11 = arith.constant 0 : index
    %12 = vector.load %arg19[%c0_10, %c0_11] : memref<8x384xf32, #tpu.memory_space<vmem>>, vector<8x128xf32>
    tpu.vector_store %arg19[%c0_10, %c0_11], %11 {strides = array<i32>} : memref<8x384xf32, #tpu.memory_space<vmem>>, vector<8x128xf32>,
    %13 = arith.truncf %11 : vector<8x128xf32> to vector<8x128xbf16>
    %c0_12 = arith.constant 0 : index
    %c0_13 = arith.constant 0 : index
    %14 = vector.load %arg7[%c0_12, %c0_13] : memref<128x128xbf16, #tpu.memory_space<vmem>>, vector<128x128xbf16>
    %cst_14 = arith.constant dense<0.000000e+00> : vector<8x128xf32>
    %15 = tpu.matmul %13, %14, %cst_14 {dimension_numbers = #tpu.dot_dimension_numbers<[1], [0], [0], [1], [0, 0, 1, 1], [], []>} : vector<8x128xbf16>, vector<128x128xbf16>, vector<8x128xf32> -> vector<8x128xf32>
    %c0_15 = arith.constant 0 : index
    %c0_16 = arith.constant 0 : index
    %16 = vector.load %arg8[%c0_15, %c0_16] : memref<1x128xf32, #tpu.memory_space<vmem>>, vector<1x128xf32>
    %17 = vector.broadcast %16 : vector<1x128xf32> to vector<8x128xf32>
    %18 = arith.addf %15, %17 : vector<8x128xf32>
    %cst_17 = arith.constant 5.000000e-01 : f32
    %19 = vector.broadcast %cst_17 : f32 to vector<8x128xf32>
    %20 = arith.mulf %19, %18 : vector<8x128xf32>
    %cst_18 = arith.constant 0.707106769 : f32
    %21 = vector.broadcast %cst_18 : f32 to vector<8x128xf32>
    %22 = arith.mulf %18, %21 : vector<8x128xf32>
    %23 = math.erf %22 : vector<8x128xf32>
    %cst_19 = arith.constant 1.000000e+00 : f32
    %24 = vector.broadcast %cst_19 : f32 to vector<8x128xf32>
    %25 = arith.addf %24, %23 : vector<8x128xf32>
    %26 = arith.mulf %20, %25 : vector<8x128xf32>
    %27 = arith.truncf %26 : vector<8x128xf32> to vector<8x128xbf16>
    %c0_20 = arith.constant 0 : index
    %c0_21 = arith.constant 0 : index
    %28 = vector.load %arg9[%c0_20, %c0_21] : memref<128x128xbf16, #tpu.memory_space<vmem>>, vector<128x128xbf16>
    %cst_22 = arith.constant dense<0.000000e+00> : vector<8x128xf32>
    %29 = tpu.matmul %27, %28, %cst_22 {dimension_numbers = #tpu.dot_dimension_numbers<[1], [0], [0], [1], [0, 0, 1, 1], [], []>} : vector<8x128xbf16>, vector<128x128xbf16>, vector<8x128xf32> -> vector<8x128xf32>
    %c0_23 = arith.constant 0 : index
    %c0_24 = arith.constant 0 : index
    %30 = vector.load %arg10[%c0_23, %c0_24] : memref<1x128xf32, #tpu.memory_space<vmem>>, vector<1x128xf32>
    %31 = vector.broadcast %30 : vector<1x128xf32> to vector<8x128xf32>
    %32 = arith.addf %29, %31 : vector<8x128xf32>
    %cst_25 = arith.constant 5.000000e-01 : f32
    %33 = vector.broadcast %cst_25 : f32 to vector<8x128xf32>
    %34 = arith.mulf %33, %32 : vector<8x128xf32>
    %cst_26 = arith.constant 0.707106769 : f32
    %35 = vector.broadcast %cst_26 : f32 to vector<8x128xf32>
    %36 = arith.mulf %32, %35 : vector<8x128xf32>
    %37 = math.erf %36 : vector<8x128xf32>
    %cst_27 = arith.constant 1.000000e+00 : f32
    %38 = vector.broadcast %cst_27 : f32 to vector<8x128xf32>
    %39 = arith.addf %38, %37 : vector<8x128xf32>
    %40 = arith.mulf %34, %39 : vector<8x128xf32>
    %c0_28 = arith.constant 0 : index
    %41 = memref.load %arg1[%c0_28] : memref<4xf32, #tpu.memory_space<smem>>
    %42 = vector.broadcast %41 : f32 to vector<8x128xf32>
    %43 = arith.mulf %42, %40 : vector<8x128xf32>
    %cst_29 = arith.constant 1.000000e+00 : f32
    %44 = arith.subf %cst_29, %41 : f32
    %45 = vector.broadcast %44 : f32 to vector<8x128xf32>
    %46 = arith.mulf %45, %5 : vector<8x128xf32>
    %47 = arith.addf %43, %46 : vector<8x128xf32>
    %48 = arith.truncf %47 : vector<8x128xf32> to vector<8x128xbf16>
    %c0_30 = arith.constant 0 : index
    %c0_31 = arith.constant 0 : index
    %49 = vector.load %arg11[%c0_30, %c0_31] : memref<128x128xbf16, #tpu.memory_space<vmem>>, vector<128x128xbf16>
    %cst_32 = arith.constant dense<0.000000e+00> : vector<8x128xf32>
    %50 = tpu.matmul %48, %49, %cst_32 {dimension_numbers = #tpu.dot_dimension_numbers<[1], [0], [0], [1], [0, 0, 1, 1], [], []>} : vector<8x128xbf16>, vector<128x128xbf16>, vector<8x128xf32> -> vector<8x128xf32>
    %c0_33 = arith.constant 0 : index
    %c0_34 = arith.constant 0 : index
    %51 = vector.load %arg12[%c0_33, %c0_34] : memref<1x128xf32, #tpu.memory_space<vmem>>, vector<1x128xf32>
    %52 = vector.broadcast %51 : vector<1x128xf32> to vector<8x128xf32>
    %53 = arith.addf %50, %52 : vector<8x128xf32>
    %c0_35 = arith.constant 0 : index
    %c128 = arith.constant 128 : index
    %54 = vector.load %arg19[%c0_35, %c128] : memref<8x384xf32, #tpu.memory_space<vmem>>, vector<8x128xf32>
    tpu.vector_store %arg19[%c0_35, %c128], %53 {strides = array<i32>} : memref<8x384xf32, #tpu.memory_space<vmem>>, vector<8x128xf32>,
    %55 = arith.truncf %53 : vector<8x128xf32> to vector<8x128xbf16>
    %c0_36 = arith.constant 0 : index
    %c0_37 = arith.constant 0 : index
    %56 = vector.load %arg13[%c0_36, %c0_37] : memref<128x128xbf16, #tpu.memory_space<vmem>>, vector<128x128xbf16>
    %cst_38 = arith.constant dense<0.000000e+00> : vector<8x128xf32>
    %57 = tpu.matmul %55, %56, %cst_38 {dimension_numbers = #tpu.dot_dimension_numbers<[1], [0], [0], [1], [0, 0, 1, 1], [], []>} : vector<8x128xbf16>, vector<128x128xbf16>, vector<8x128xf32> -> vector<8x128xf32>
    %c0_39 = arith.constant 0 : index
    %c0_40 = arith.constant 0 : index
    %58 = vector.load %arg14[%c0_39, %c0_40] : memref<1x128xf32, #tpu.memory_space<vmem>>, vector<1x128xf32>
    %59 = vector.broadcast %58 : vector<1x128xf32> to vector<8x128xf32>
    %60 = arith.addf %57, %59 : vector<8x128xf32>
    %cst_41 = arith.constant 5.000000e-01 : f32
    %61 = vector.broadcast %cst_41 : f32 to vector<8x128xf32>
    %62 = arith.mulf %61, %60 : vector<8x128xf32>
    %cst_42 = arith.constant 0.707106769 : f32
    %63 = vector.broadcast %cst_42 : f32 to vector<8x128xf32>
    %64 = arith.mulf %60, %63 : vector<8x128xf32>
    %65 = math.erf %64 : vector<8x128xf32>
    %cst_43 = arith.constant 1.000000e+00 : f32
    %66 = vector.broadcast %cst_43 : f32 to vector<8x128xf32>
    %67 = arith.addf %66, %65 : vector<8x128xf32>
    %68 = arith.mulf %62, %67 : vector<8x128xf32>
    %69 = arith.truncf %68 : vector<8x128xf32> to vector<8x128xbf16>
    %c0_44 = arith.constant 0 : index
    %c0_45 = arith.constant 0 : index
    %70 = vector.load %arg15[%c0_44, %c0_45] : memref<128x128xbf16, #tpu.memory_space<vmem>>, vector<128x128xbf16>
    %cst_46 = arith.constant dense<0.000000e+00> : vector<8x128xf32>
    %71 = tpu.matmul %69, %70, %cst_46 {dimension_numbers = #tpu.dot_dimension_numbers<[1], [0], [0], [1], [0, 0, 1, 1], [], []>} : vector<8x128xbf16>, vector<128x128xbf16>, vector<8x128xf32> -> vector<8x128xf32>
    %c0_47 = arith.constant 0 : index
    %c0_48 = arith.constant 0 : index
    %72 = vector.load %arg16[%c0_47, %c0_48] : memref<1x128xf32, #tpu.memory_space<vmem>>, vector<1x128xf32>
    %73 = vector.broadcast %72 : vector<1x128xf32> to vector<8x128xf32>
    %74 = arith.addf %71, %73 : vector<8x128xf32>
    %cst_49 = arith.constant 5.000000e-01 : f32
    %75 = vector.broadcast %cst_49 : f32 to vector<8x128xf32>
    %76 = arith.mulf %75, %74 : vector<8x128xf32>
    %cst_50 = arith.constant 0.707106769 : f32
    %77 = vector.broadcast %cst_50 : f32 to vector<8x128xf32>
    %78 = arith.mulf %74, %77 : vector<8x128xf32>
    %79 = math.erf %78 : vector<8x128xf32>
    %cst_51 = arith.constant 1.000000e+00 : f32
    %80 = vector.broadcast %cst_51 : f32 to vector<8x128xf32>
    %81 = arith.addf %80, %79 : vector<8x128xf32>
    %82 = arith.mulf %76, %81 : vector<8x128xf32>
    %c1 = arith.constant 1 : index
    %83 = memref.load %arg1[%c1] : memref<4xf32, #tpu.memory_space<smem>>
    %84 = vector.broadcast %83 : f32 to vector<8x128xf32>
    %85 = arith.mulf %84, %40 : vector<8x128xf32>
    %c2 = arith.constant 2 : index
    %86 = memref.load %arg1[%c2] : memref<4xf32, #tpu.memory_space<smem>>
    %87 = vector.broadcast %86 : f32 to vector<8x128xf32>
    %88 = arith.mulf %87, %82 : vector<8x128xf32>
    %89 = arith.addf %85, %88 : vector<8x128xf32>
    %c3 = arith.constant 3 : index
    %90 = memref.load %arg1[%c3] : memref<4xf32, #tpu.memory_space<smem>>
    %91 = vector.broadcast %90 : f32 to vector<8x128xf32>
    %92 = arith.mulf %91, %5 : vector<8x128xf32>
    %93 = arith.addf %89, %92 : vector<8x128xf32>
    %94 = arith.truncf %93 : vector<8x128xf32> to vector<8x128xbf16>
    %c0_52 = arith.constant 0 : index
    %c0_53 = arith.constant 0 : index
    %95 = vector.load %arg17[%c0_52, %c0_53] : memref<128x128xbf16, #tpu.memory_space<vmem>>, vector<128x128xbf16>
    %cst_54 = arith.constant dense<0.000000e+00> : vector<8x128xf32>
    %96 = tpu.matmul %94, %95, %cst_54 {dimension_numbers = #tpu.dot_dimension_numbers<[1], [0], [0], [1], [0, 0, 1, 1], [], []>} : vector<8x128xbf16>, vector<128x128xbf16>, vector<8x128xf32> -> vector<8x128xf32>
    %c0_55 = arith.constant 0 : index
    %c0_56 = arith.constant 0 : index
    %97 = vector.load %arg18[%c0_55, %c0_56] : memref<1x128xf32, #tpu.memory_space<vmem>>, vector<1x128xf32>
    %98 = vector.broadcast %97 : vector<1x128xf32> to vector<8x128xf32>
    %99 = arith.addf %96, %98 : vector<8x128xf32>
    %c0_57 = arith.constant 0 : index
    %c256 = arith.constant 256 : index
    %100 = vector.load %arg19[%c0_57, %c256] : memref<8x384xf32, #tpu.memory_space<vmem>>, vector<8x128xf32>
    tpu.vector_store %arg19[%c0_57, %c256], %99 {strides = array<i32>} : memref<8x384xf32, #tpu.memory_space<vmem>>, vector<8x128xf32>,
    return
  }
  func.func @transform_0(%arg0: i32) -> i32 {
    %c0_i32 = arith.constant 0 : i32
    %c0_i32_0 = arith.constant 0 : i32
    return %c0_i32 : i32
  }
  func.func @transform_1(%arg0: i32) -> (i32, i32) {
    %c0_i32 = arith.constant 0 : i32
    %c0_i32_0 = arith.constant 0 : i32
    return %arg0, %c0_i32 : i32, i32
  }
  func.func @transform_2(%arg0: i32) -> (i32, i32) {
    %c0_i32 = arith.constant 0 : i32
    %c0_i32_0 = arith.constant 0 : i32
    %c0_i32_1 = arith.constant 0 : i32
    return %c0_i32, %c0_i32_0 : i32, i32
  }
  func.func @transform_3(%arg0: i32) -> (i32, i32) {
    %c0_i32 = arith.constant 0 : i32
    %c0_i32_0 = arith.constant 0 : i32
    %c0_i32_1 = arith.constant 0 : i32
    return %c0_i32, %c0_i32_0 : i32, i32
  }
  func.func @transform_4(%arg0: i32) -> (i32, i32) {
    %c0_i32 = arith.constant 0 : i32
    %c0_i32_0 = arith.constant 0 : i32
    %c0_i32_1 = arith.constant 0 : i32
    return %c0_i32, %c0_i32_0 : i32, i32
  }
  func.func @transform_5(%arg0: i32) -> (i32, i32) {
    %c0_i32 = arith.constant 0 : i32
    %c0_i32_0 = arith.constant 0 : i32
    %c0_i32_1 = arith.constant 0 : i32
    return %c0_i32, %c0_i32_0 : i32, i32
  }
  func.func @transform_6(%arg0: i32) -> (i32, i32) {
    %c0_i32 = arith.constant 0 : i32
    %c0_i32_0 = arith.constant 0 : i32
    %c0_i32_1 = arith.constant 0 : i32
    return %c0_i32, %c0_i32_0 : i32, i32
  }
  func.func @transform_7(%arg0: i32) -> (i32, i32) {
    %c0_i32 = arith.constant 0 : i32
    %c0_i32_0 = arith.constant 0 : i32
    %c0_i32_1 = arith.constant 0 : i32
    return %c0_i32, %c0_i32_0 : i32, i32
  }
  func.func @transform_8(%arg0: i32) -> (i32, i32) {
    %c0_i32 = arith.constant 0 : i32
    %c0_i32_0 = arith.constant 0 : i32
    %c0_i32_1 = arith.constant 0 : i32
    return %c0_i32, %c0_i32_0 : i32, i32
  }
  func.func @transform_9(%arg0: i32) -> (i32, i32) {
    %c0_i32 = arith.constant 0 : i32
    %c0_i32_0 = arith.constant 0 : i32
    %c0_i32_1 = arith.constant 0 : i32
    return %c0_i32, %c0_i32_0 : i32, i32
  }
  func.func @transform_10(%arg0: i32) -> (i32, i32) {
    %c0_i32 = arith.constant 0 : i32
    %c0_i32_0 = arith.constant 0 : i32
    %c0_i32_1 = arith.constant 0 : i32
    return %c0_i32, %c0_i32_0 : i32, i32
  }
  func.func @transform_11(%arg0: i32) -> (i32, i32) {
    %c0_i32 = arith.constant 0 : i32
    %c0_i32_0 = arith.constant 0 : i32
    %c0_i32_1 = arith.constant 0 : i32
    return %c0_i32, %c0_i32_0 : i32, i32
  }
  func.func @transform_12(%arg0: i32) -> (i32, i32) {
    %c0_i32 = arith.constant 0 : i32
    %c0_i32_0 = arith.constant 0 : i32
    %c0_i32_1 = arith.constant 0 : i32
    return %c0_i32, %c0_i32_0 : i32, i32
  }
  func.func @transform_13(%arg0: i32) -> (i32, i32) {
    %c0_i32 = arith.constant 0 : i32
    %c0_i32_0 = arith.constant 0 : i32
    %c0_i32_1 = arith.constant 0 : i32
    return %c0_i32, %c0_i32_0 : i32, i32
  }
  func.func @transform_14(%arg0: i32) -> (i32, i32) {
    %c0_i32 = arith.constant 0 : i32
    %c0_i32_0 = arith.constant 0 : i32
    %c0_i32_1 = arith.constant 0 : i32
    return %c0_i32, %c0_i32_0 : i32, i32
  }
  func.func @transform_15(%arg0: i32) -> (i32, i32) {
    %c0_i32 = arith.constant 0 : i32
    %c0_i32_0 = arith.constant 0 : i32
    %c0_i32_1 = arith.constant 0 : i32
    return %c0_i32, %c0_i32_0 : i32, i32
  }
  func.func @transform_16(%arg0: i32) -> (i32, i32) {
    %c0_i32 = arith.constant 0 : i32
    %c0_i32_0 = arith.constant 0 : i32
    %c0_i32_1 = arith.constant 0 : i32
    return %c0_i32, %c0_i32_0 : i32, i32
  }
  func.func @transform_17(%arg0: i32) -> (i32, i32) {
    %c0_i32 = arith.constant 0 : i32
    %c0_i32_0 = arith.constant 0 : i32
    %c0_i32_1 = arith.constant 0 : i32
    return %c0_i32, %c0_i32_0 : i32, i32
  }
  func.func @transform_18(%arg0: i32) -> (i32, i32) {
    %c0_i32 = arith.constant 0 : i32
    %c0_i32_0 = arith.constant 0 : i32
    return %arg0, %c0_i32 : i32, i32
  }
}

</mosaic_0001>

<bundles_post_ra>
// kernel: _forward.1
= control target key start
LH: loop header
LB: loop body
LE: loop exit
PB: predicated region body
PF: predicated region fallthrough
CT: control target
= control target key end

     0   :  { %s1990_s0 = inlined_call_operand.vmem [shape: f32[4], index: 0, kind: input, shape index: {}]   ;;  %s1991_s1 = inlined_call_operand.vmem [shape: bf16[8,128], index: 1, kind: input, shape index: {}]   ;;  %s1992_s2 = inlined_call_operand.hbm [shape: bf16[128,128], index: 2, kind: input, shape index: {}]   ;;  %s1993_s3 = inlined_call_operand.vmem [shape: f32[1,128], index: 3, kind: input, shape index: {}]   ;;  %s1994_s4 = inlined_call_operand.hbm [shape: bf16[128,128], index: 4, kind: input, shape index: {}]   ;;  %s1995_s5 = inlined_call_operand.vmem [shape: f32[1,128], index: 5, kind: input, shape index: {}]   ;;  %s1996_s6 = inlined_call_operand.hbm [shape: bf16[128,128], index: 6, kind: input, shape index: {}]   ;;  %s1997_s7 = inlined_call_operand.vmem [shape: f32[1,128], index: 7, kind: input, shape index: {}]   ;;  %s1998_s8 = inlined_call_operand.hbm [shape: bf16[128,128], index: 8, kind: input, shape index: {}]   ;;  %s1999_s9 = inlined_call_operand.vmem [shape: f32[1,128], index: 9, kind: input, shape index: {}]   ;;  %s2000_s10 = inlined_call_operand.hbm [shape: bf16[128,128], index: 10, kind: input, shape index: {}]   ;;  %s2001_s11 = inlined_call_operand.vmem [shape: f32[1,128], index: 11, kind: input, shape index: {}]   ;;  %s2002_s12 = inlined_call_operand.hbm [shape: bf16[128,128], index: 12, kind: input, shape index: {}]   ;;  %s2003_s13 = inlined_call_operand.vmem [shape: f32[1,128], index: 13, kind: input, shape index: {}]   ;;  %s2004_s14 = inlined_call_operand.hbm [shape: bf16[128,128], index: 14, kind: input, shape index: {}]   ;;  %s2005_s15 = inlined_call_operand.vmem [shape: f32[1,128], index: 15, kind: input, shape index: {}]   ;;  %s2006_s16 = inlined_call_operand.hbm [shape: bf16[128,128], index: 16, kind: input, shape index: {}]   ;;  %s2007_s17 = inlined_call_operand.vmem [shape: f32[1,128], index: 17, kind: input, shape index: {}]   ;;  %s2008_s18 = inlined_call_operand.vmem [shape: f32[8,384], index: 18, kind: output, shape index: {}]  }
   0x1   :  { %2009 = sst [smem:[#allocation23_spill]] %s1990_s0 }
   0x2   :  { %2010 = sst [smem:[#allocation24_spill]] %s1991_s1 }
   0x3   :  { %2011 = sst [smem:[#allocation25_spill]] %s1992_s2 }
   0x4   :  { %23 = vsyncpa [#allocation4], 0 }
   0x5   :  { %24 = vsyncpa [#allocation3], 0 }
   0x6   :  { %25 = vsyncpa [#allocation7], 0 }
   0x7   :  { %26 = vsyncpa [#allocation10], 0 }
   0x8   :  { %27 = vsyncpa [#allocation13], 0 }
   0x9   :  { %28 = vsyncpa [#allocation16], 0  ;;  %s1705_s27 = smov [#allocation6]   ;;  %s1706_s29 = smov [#allocation9]  }
   0xa   :  { %s60_s28 = sshll.u32 %s1705_s27, 4  ;;  %s88_s30 = sshll.u32 %s1706_s29, 4  ;;  %s61_s28 = int_to_ptr.vmem [resolvable:$true] %s60_s28  ;;  %s89_s30 = int_to_ptr.vmem [resolvable:$true] %s88_s30 }
   0xb   :  { %s1529_s0 = scalar_lea.vmem %s61_s28, 1024  ;;  %p1534_p1 = scmp.lt.s32.totalorder %s61_s28, %s61_s28 }
   0xc   :  { %p1530_p0 = scmp.ne.s32.totalorder %s61_s28, %s1529_s0  ;;  %p1535_p2 = scmp.lt.s32.totalorder %s1529_s0, %s1529_s0 }
   0xe   :  { %p1536_p3 = por %p1535_p2, %p1534_p1 }
  0x10   :  { %p1537_p4 = pnand %p1536_p3, %p1530_p0 }
  0x12   :  { %1540 = shalt.err (!%p1537_p4)
}
  0x13   :  { %s1707_s19 = smov 64   ;;  %s1708_s1 = smov 4  }
  0x14   :  { %66 = dma.hbm_to_vmem [thread:$0]  %s1994_s4, 1024, %s61_s28, [#allocation7], %s1707_s19, %s1707_s19, %s1708_s1  }
  0x15   :  { %s1549_s22 = scalar_lea.vmem %s89_s30, 1024  ;;  %p1554_p6 = scmp.lt.s32.totalorder %s89_s30, %s89_s30 }
  0x16   :  { %p1550_p5 = scmp.ne.s32.totalorder %s89_s30, %s1549_s22  ;;  %p1555_p7 = scmp.lt.s32.totalorder %s1549_s22, %s1549_s22 }
  0x18   :  { %p1556_p8 = por %p1555_p7, %p1554_p6 }
  0x1a   :  { %p1557_p9 = pnand %p1556_p8, %p1550_p5 }
  0x1c   :  { %1560 = shalt.err (!%p1557_p9)
}
  0x1d   :  { %94 = dma.hbm_to_vmem [thread:$0]  %s1998_s8, 1024, %s89_s30, [#allocation10], %s1707_s19, %s1707_s19, %s1708_s1  }
  0x1e   :  { %s2012_s26 = sld [smem:[#allocation23_spill]]  ;;  %s1709_s29 = smov [#allocation12]  }
  0x1f   :  { %s116_s4 = sshll.u32 %s1709_s29, 4  ;;  %s117_s4 = int_to_ptr.vmem [resolvable:$true] %s116_s4 }
  0x20   :  { %s1569_s28 = scalar_lea.vmem %s117_s4, 1024  ;;  %p1574_p11 = scmp.lt.s32.totalorder %s117_s4, %s117_s4 }
  0x21   :  { %p1570_p10 = scmp.ne.s32.totalorder %s117_s4, %s1569_s28  ;;  %p1575_p12 = scmp.lt.s32.totalorder %s1569_s28, %s1569_s28 }
  0x23   :  { %p1576_p13 = por %p1575_p12, %p1574_p11 }
  0x24   :  { %s35_s27 = sshll.u32 %s2012_s26, 4  ;;  %s36_s27 = int_to_ptr.vmem [resolvable:$true] %s35_s27 }
  0x25   :  { %p1577_p0 = pnand %p1576_p13, %p1570_p10 }
  0x27   :  { %1580 = shalt.err (!%p1577_p0)
}
  0x28   :  { %122 = dma.hbm_to_vmem [thread:$0]  %s2002_s12, 1024, %s117_s4, [#allocation13], %s1707_s19, %s1707_s19, %s1708_s1  }
  0x29   :  { %s1581_s30 = scalar_lea.vmem %s36_s27, 16  ;;  %p1586_p2 = scmp.lt.s32.totalorder %s36_s27, %s36_s27 }
  0x2a   :  { %p1582_p1 = scmp.ne.s32.totalorder %s36_s27, %s1581_s30  ;;  %p1587_p3 = scmp.lt.s32.totalorder %s1581_s30, %s1581_s30 }
  0x2c   :  { %p1588_p4 = por %p1587_p3, %p1586_p2 }
  0x2e   :  { %p1589_p5 = pnand %p1588_p4, %p1582_p1 }
  0x30   :  { %1592 = shalt.err (!%p1589_p5)
}
  0x31   :  { %s1710_s20 = smov [#allocation2]   ;;  %s1711_s21 = smov [#allocation5]  }
  0x32   :  { %38 = dma.vmem_to_smem %s36_s27, 16, %s1710_s20, [#allocation4]  }
  0x33   :  { %s46_s22 = sshll.u32 %s1711_s21, 4  ;;  %s1712_s2 = smov [#allocation8]   ;;  %s47_s22 = int_to_ptr.vmem [resolvable:$true] %s46_s22 }
  0x34   :  { %s74_s23 = sshll.u32 %s1712_s2, 4  ;;  %s1601_s24 = scalar_lea.vmem %s47_s22, 1024  ;;  %s75_s23 = int_to_ptr.vmem [resolvable:$true] %s74_s23 }
  0x35   :  { %p1602_p6 = scmp.ne.s32.totalorder %s47_s22, %s1601_s24  ;;  %p1606_p7 = scmp.lt.s32.totalorder %s47_s22, %s47_s22 }
  0x36   :  { %p1607_p8 = scmp.lt.s32.totalorder %s1601_s24, %s1601_s24 }
  0x38   :  { %p1608_p9 = por %p1607_p8, %p1606_p7 }
  0x3a   :  { %p1609_p10 = pnand %p1608_p9, %p1602_p6 }
  0x3c   :  { %1612 = shalt.err (!%p1609_p10)
}
  0x3d   :  { %s2013_s26 = sld [smem:[#allocation25_spill]]  ;;  %s1621_s27 = scalar_lea.vmem %s75_s23, 1024 }
  0x3e   :  { %p1622_p11 = scmp.ne.s32.totalorder %s75_s23, %s1621_s27  ;;  %p1626_p12 = scmp.lt.s32.totalorder %s75_s23, %s75_s23 }
  0x3f   :  { %p1627_p13 = scmp.lt.s32.totalorder %s1621_s27, %s1621_s27 }
  0x41   :  { %p1628_p0 = por %p1627_p13, %p1626_p12 }
  0x43   :  { %52 = dma.hbm_to_vmem [thread:$0]  %s2013_s26, 1024, %s47_s22, [#allocation3], %s1707_s19, %s1707_s19, %s1708_s1  }
  0x44   :  { %p1629_p1 = pnand %p1628_p0, %p1622_p11 }
  0x46   :  { %1632 = shalt.err (!%p1629_p1)
}
  0x47   :  { %80 = dma.hbm_to_vmem [thread:$0]  %s1996_s6, 1024, %s75_s23, [#allocation7], %s1707_s19, %s1707_s19, %s1708_s1  }
  0x48   :  { %s1713_s28 = smov [#allocation11]   ;;  %s1714_s8 = smov [#allocation14]  }
  0x49   :  { %s102_s0 = sshll.u32 %s1713_s28, 4  ;;  %s130_s30 = sshll.u32 %s1714_s8, 4  ;;  %s103_s0 = int_to_ptr.vmem [resolvable:$true] %s102_s0  ;;  %s131_s30 = int_to_ptr.vmem [resolvable:$true] %s130_s30 }
  0x4a   :  { %s1641_s20 = scalar_lea.vmem %s103_s0, 1024  ;;  %p1646_p3 = scmp.lt.s32.totalorder %s103_s0, %s103_s0 }
  0x4b   :  { %p1642_p2 = scmp.ne.s32.totalorder %s103_s0, %s1641_s20  ;;  %p1647_p4 = scmp.lt.s32.totalorder %s1641_s20, %s1641_s20 }
  0x4d   :  { %p1648_p5 = por %p1647_p4, %p1646_p3 }
  0x4f   :  { %p1649_p6 = pnand %p1648_p5, %p1642_p2 }
  0x51   :  { %1652 = shalt.err (!%p1649_p6)
}
  0x52   :  { %108 = dma.hbm_to_vmem [thread:$0]  %s2000_s10, 1024, %s103_s0, [#allocation10], %s1707_s19, %s1707_s19, %s1708_s1  }
  0x53   :  { %s1661_s6 = scalar_lea.vmem %s131_s30, 1024  ;;  %p1666_p8 = scmp.lt.s32.totalorder %s131_s30, %s131_s30 }
  0x54   :  { %p1662_p7 = scmp.ne.s32.totalorder %s131_s30, %s1661_s6  ;;  %p1667_p9 = scmp.lt.s32.totalorder %s1661_s6, %s1661_s6 }
  0x56   :  { %p1668_p10 = por %p1667_p9, %p1666_p8 }
  0x58   :  { %p1669_p11 = pnand %p1668_p10, %p1662_p7 }
  0x5a   :  { %1672 = shalt.err (!%p1669_p11)
}
  0x5b   :  { %136 = dma.hbm_to_vmem [thread:$0]  %s2004_s14, 1024, %s131_s30, [#allocation13], %s1707_s19, %s1707_s19, %s1708_s1  }
  0x5c   :  { %s1715_s24 = smov [#allocation15]  }
  0x5d   :  { %s144_s12 = sshll.u32 %s1715_s24, 4  ;;  %s145_s12 = int_to_ptr.vmem [resolvable:$true] %s144_s12 }
  0x5e   :  { %s1681_s25 = scalar_lea.vmem %s145_s12, 1024  ;;  %p1686_p13 = scmp.lt.s32.totalorder %s145_s12, %s145_s12 }
  0x5f   :  { %p1682_p12 = scmp.ne.s32.totalorder %s145_s12, %s1681_s25  ;;  %p1687_p0 = scmp.lt.s32.totalorder %s1681_s25, %s1681_s25 }
  0x61   :  { %p1688_p1 = por %p1687_p0, %p1686_p13 }
  0x63   :  { %p1689_p2 = pnand %p1688_p1, %p1682_p12 }
  0x65   :  { %1692 = shalt.err (!%p1689_p2)
}
  0x66   :  { %150 = dma.hbm_to_vmem [thread:$0]  %s2006_s16, 1024, %s145_s12, [#allocation16], %s1707_s19, %s1707_s19, %s1708_s1  }
  0x67   :  { %1693 = dma.done.wait [#allocation4], 16  }
  0x68   :  { %1694 = vsyncadd [#allocation4], 4294967280 }
  0x69   :  { %1695 = dma.done.wait [#allocation3], 1024  }
  0x6a   :  { %1696 = vsyncadd [#allocation3], 4294966272 }
  0x6b   :  { %1697 = dma.done.wait [#allocation7], 2048  }
  0x6c   :  { %1698 = vsyncadd [#allocation7], 4294965248 }
  0x6d   :  { %1699 = dma.done.wait [#allocation10], 2048  }
  0x6e   :  { %1700 = vsyncadd [#allocation10], 4294965248 }
  0x6f   :  { %1701 = dma.done.wait [#allocation13], 2048  }
  0x70   :  { %1702 = vsyncadd [#allocation13], 4294965248 }
  0x71   :  { %1703 = dma.done.wait [#allocation16], 1024  }
  0x72   :  { %1704 = vsyncadd [#allocation16], 4294966272 }
  0x73   :  { %180 = sfence }
  0x74   :  { %v1449_v0 = vld [vmem:[#allocation5 + $0x38] sm:$0xff]   ;;  %v1716_v1 = vmov 0.0   ;;  %v1450_v2 = vld [vmem:[#allocation5 + $0x30] sm:$0xff]   ;;  %vm1717_vm0 = vmmov 0   ;;  %v1451_v3 = vld [vmem:[#allocation5 + $0x28] sm:$0xff]   ;;  %s2014_s19 = sld [smem:[#allocation24_spill]] }
  0x75   :  { %1276 = vmatprep.subr.bf16.mxu0 %v1716_v1  ;;  %1296 = vmatprep.subr.bf16.mxu1 %v1716_v1  ;;  %v1457_v4 = vld [vmem:[#allocation6 + $0x38] sm:$0xff]   ;;  %v1452_v5 = vld [vmem:[#allocation5 + $0x20] sm:$0xff]   ;;  %v1458_v6 = vld [vmem:[#allocation6 + $0x30] sm:$0xff]   ;;  %s641_s30 = sld [smem:[#allocation2]] }
  0x76   :  { %1277 = vmatpush3.bf16.msra.mxu0 %v1449_v0  ;;  %1292 = vmatprep.mubr.msk.bf16.mxu0 %vm1717_vm0, %v1716_v1  ;;  %v1453_v7 = vld [vmem:[#allocation5 + $0x18] sm:$0xff]   ;;  %v1459_v8 = vld [vmem:[#allocation6 + $0x28] sm:$0xff]   ;;  %v1454_v9 = vld [vmem:[#allocation5 + $0x10] sm:$0xff]   ;;  %s1192_s24 = sld [smem:[#allocation2 + $0x1]] }
  0x77   :  { %1278 = vmatprep.subr.bf16.mxu0 %v1716_v1  ;;  %1312 = vmatprep.mubr.msk.bf16.mxu1 %vm1717_vm0, %v1716_v1  ;;  %v1460_v10 = vld [vmem:[#allocation6 + $0x20] sm:$0xff]   ;;  %v1455_v11 = vld [vmem:[#allocation5 + $0x8] sm:$0xff]   ;;  %v1461_v12 = vld [vmem:[#allocation6 + $0x18] sm:$0xff]   ;;  %s1193_s12 = sld [smem:[#allocation2 + $0x2]] }
  0x78   :  { %1297 = vmatpush3.bf16.msra.mxu1 %v1457_v4  ;;  %v1456_v13 = vld [vmem:[#allocation5] sm:$0xff]   ;;  %v1462_v14 = vld [vmem:[#allocation6 + $0x10] sm:$0xff]   ;;  %v1463_v16 = vld [vmem:[#allocation6 + $0x8] sm:$0xff]   ;;  %s1194_s25 = sld [smem:[#allocation2 + $0x3]] }
  0x79   :  { %1298 = vmatprep.subr.bf16.mxu1 %v1716_v1  ;;  %v1464_v17 = vld [vmem:[#allocation6] sm:$0xff]   ;;  %v1465_v18 = vld [vmem:[#allocation8 + $0x38] sm:$0xff]   ;;  %v1466_v19 = vld [vmem:[#allocation8 + $0x30] sm:$0xff]  }
  0x7a   :  { %1279 = vmatpush3.bf16.msra.mxu0 %v1450_v2  ;;  %v182_v15 = vld [vmem:[%s2014_s19] sm:$0xf]  ;;  %v1467_v20 = vld [vmem:[#allocation8 + $0x28] sm:$0xff]   ;;  %v1469_v22 = vld [vmem:[#allocation8 + $0x18] sm:$0xff]  }
  0x7b   :  { %1280 = vmatprep.subr.bf16.mxu0 %v1716_v1  ;;  %v1468_v21 = vld [vmem:[#allocation8 + $0x20] sm:$0xff]   ;;  %v1470_v23 = vld [vmem:[#allocation8 + $0x10] sm:$0xff]   ;;  %v1471_v24 = vld [vmem:[#allocation8 + $0x8] sm:$0xff]   ;;  %s644_s20 = ssub.f32 1.0, %s641_s30 }
  0x7c   :  { %1299 = vmatpush3.bf16.msra.mxu1 %v1458_v6  ;;  %v1129_v25 = vld [vmem:[%s1993_s3] ss:$0 sm:$0xff]  ;;  %v1473_v33 = vld [vmem:[#allocation9 + $0x38] sm:$0xff]   ;;  %v1474_v34 = vld [vmem:[#allocation9 + $0x30] sm:$0xff]  }
  0x7d   :  { %1300 = vmatprep.subr.bf16.mxu1 %v1716_v1  ;;  %v1472_v32 = vld [vmem:[#allocation8] sm:$0xff]   ;;  %v1475_v42 = vld [vmem:[#allocation9 + $0x28] sm:$0xff]   ;;  %v1477_v44 = vld [vmem:[#allocation9 + $0x18] sm:$0xff]  }
  0x7e   :  { %1281 = vmatpush3.bf16.msra.mxu0 %v1451_v3  ;;  %v1138_v35 = vld [vmem:[%s1995_s5] ss:$0 sm:$0xff]  ;;  %v1478_v45 = vld [vmem:[#allocation9 + $0x10] sm:$0xff]   ;;  %v1479_v46 = vld [vmem:[#allocation9 + $0x8] sm:$0xff]  }
  0x7f   :  { %1282 = vmatprep.subr.bf16.mxu0 %v1716_v1  ;;  %v1476_v43 = vld [vmem:[#allocation9 + $0x20] sm:$0xff]   ;;  %v1481_v48 = vld [vmem:[#allocation11 + $0x38] sm:$0xff]   ;;  %v1482_v61 = vld [vmem:[#allocation11 + $0x30] sm:$0xff]  }
  0x80   :  { %1301 = vmatpush3.bf16.msra.mxu1 %v1459_v8  ;;  %v1480_v47 = vld [vmem:[#allocation9] sm:$0xff]   ;;  %v1483_v62 = vld [vmem:[#allocation11 + $0x28] sm:$0xff]   ;;  %v1485_v0 = vld [vmem:[#allocation11 + $0x18] sm:$0xff]  }
  0x81   :  { %1302 = vmatprep.subr.bf16.mxu1 %v1716_v1  ;;  %v1147_v49 = vld [vmem:[%s1997_s7] ss:$0 sm:$0xff]  ;;  %v1486_v2 = vld [vmem:[#allocation11 + $0x10] sm:$0xff]   ;;  %v1487_v3 = vld [vmem:[#allocation11 + $0x8] sm:$0xff]  }
  0x82   :  { %1283 = vmatpush3.bf16.msra.mxu0 %v1452_v5  ;;  %v1484_v63 = vld [vmem:[#allocation11 + $0x20] sm:$0xff]   ;;  %v1489_v5 = vld [vmem:[#allocation12 + $0x38] sm:$0xff]   ;;  %v1490_v6 = vld [vmem:[#allocation12 + $0x30] sm:$0xff]  }
  0x83   :  { %1284 = vmatprep.subr.bf16.mxu0 %v1716_v1  ;;  %v1488_v4 = vld [vmem:[#allocation11] sm:$0xff]  }
  0x84   :  { %1303 = vmatpush3.bf16.msra.mxu1 %v1460_v10  ;;  %v1492_v8 = vld [vmem:[#allocation12 + $0x20] sm:$0xff]   ;;  %v1494_v10 = vld [vmem:[#allocation12 + $0x10] sm:$0xff]  }
  0x85   :  { %1304 = vmatprep.subr.bf16.mxu1 %v1716_v1 }
  0x86   :  { %1285 = vmatpush3.bf16.msra.mxu0 %v1453_v7  ;;  %v1491_v7 = vld [vmem:[#allocation12 + $0x28] sm:$0xff]  }
  0x87   :  { %1286 = vmatprep.subr.bf16.mxu0 %v1716_v1 }
  0x88   :  { %1305 = vmatpush3.bf16.msra.mxu1 %v1461_v12  ;;  %v1156_v12 = vld [vmem:[%s1999_s9] ss:$0 sm:$0xff] }
  0x89   :  { %1306 = vmatprep.subr.bf16.mxu1 %v1716_v1 }
  0x8a   :  { %1287 = vmatpush3.bf16.msra.mxu0 %v1454_v9  ;;  %v1493_v9 = vld [vmem:[#allocation12 + $0x18] sm:$0xff]  }
  0x8b   :  { %1288 = vmatprep.subr.bf16.mxu0 %v1716_v1 }
  0x8c   :  { %1307 = vmatpush3.bf16.msra.mxu1 %v1462_v14 }
  0x8d   :  { %1308 = vmatprep.subr.bf16.mxu1 %v1716_v1 }
  0x8e   :  { %1289 = vmatpush3.bf16.msra.mxu0 %v1455_v11  ;;  %v1495_v11 = vld [vmem:[#allocation12 + $0x8] sm:$0xff]  }
  0x8f   :  { %1290 = vmatprep.subr.bf16.mxu0 %v1716_v1 }
  0x90   :  { %1309 = vmatpush3.bf16.msra.mxu1 %v1463_v16 }
  0x91   :  { %1310 = vmatprep.subr.bf16.mxu1 %v1716_v1 }
  0x92   :  { %1291 = vmatpush3.bf16.msra.mxu0 %v1456_v13 }
  0x93   :  { %1316 = vmatprep.subr.bf16.mxu0 %v1716_v1 }
  0x94   :  { %1311 = vmatpush3.bf16.msra.mxu1 %v1464_v17 }
  0x95   :  { %1293 = vmatmul.mubr.bf16.vlgmr.msra.gmra.mxu0 %v182_v15  ;;  %1336 = vmatprep.subr.bf16.mxu1 %v1716_v1 }
  0x96   :  { %1332 = vmatprep.mubr.msk.bf16.mxu0 %vm1717_vm0, %v1716_v1  ;;  %1317 = vmatpush3.bf16.msra.mxu0 %v1465_v18 }
  0x97   :  { %1318 = vmatprep.subr.bf16.mxu0 %v1716_v1 }
  0x9a   :  { %1319 = vmatpush3.bf16.msra.mxu0 %v1466_v19 }
  0x9b   :  { %1320 = vmatprep.subr.bf16.mxu0 %v1716_v1 }
  0x9e   :  { %1321 = vmatpush3.bf16.msra.mxu0 %v1467_v20 }
  0x9f   :  { %1322 = vmatprep.subr.bf16.mxu0 %v1716_v1 }
  0xa2   :  { %1323 = vmatpush3.bf16.msra.mxu0 %v1468_v21 }
  0xa3   :  { %1324 = vmatprep.subr.bf16.mxu0 %v1716_v1 }
  0xa6   :  { %1325 = vmatpush3.bf16.msra.mxu0 %v1469_v22  ;;  %v645_v22 = vstv %s644_s20 }
  0xa7   :  { %1326 = vmatprep.subr.bf16.mxu0 %v1716_v1 }
  0xaa   :  { %1327 = vmatpush3.bf16.msra.mxu0 %v1470_v23  ;;  %v642_v23 = vstv %s641_s30 }
  0xab   :  { %1328 = vmatprep.subr.bf16.mxu0 %v1716_v1 }
  0xae   :  { %1329 = vmatpush3.bf16.msra.mxu0 %v1471_v24 }
  0xaf   :  { %1330 = vmatprep.subr.bf16.mxu0 %v1716_v1 }
  0xb2   :  { %1331 = vmatpush3.bf16.msra.mxu0 %v1472_v32  ;;  %v1498_v32 = vld [vmem:[#allocation14 + $0x30] sm:$0xff]  }
  0xb3   :  { %1356 = vmatprep.subr.bf16.mxu0 %v1716_v1 }
 0x155   :  { %v288_v26 = vpop.f32.mrf.mxu0 }
 0x156   :  { %v1901_v27 = vadd.f32 %v1129_v25, %v288_v26 }
 0x157   :  { %v1294_v28 = vpop.f32.mrf.mxu0 }
 0x158   :  { %v294_v29 = vpack.c.bf16 %v1901_v27, %v1901_v27  ;;  %v646_v25 = vmul.f32 %v645_v22, %v1901_v27  ;;  %v1195_v22 = vld [vmem:[%s2007_s17] ss:$0 sm:$0xff] }
 0x159   :  { %v291_v30 = vpop.f32.mrf.mxu0 }
 0x15a   :  { %1313 = vmatmul.mubr.bf16.vlgmr.msra.gmra.mxu1 %v294_v29  ;;  %v1496_v30 = vld [vmem:[#allocation12] sm:$0xff]  }
 0x15b   :  { %v1295_v31 = vpop.f32.mrf.mxu0  ;;  %1352 = vmatprep.mubr.msk.bf16.mxu1 %vm1717_vm0, %v1716_v1  ;;  %1337 = vmatpush3.bf16.msra.mxu1 %v1473_v33  ;;  %v1165_v33 = vld [vmem:[%s2001_s11] ss:$0 sm:$0xff] }
 0x15c   :  { %1338 = vmatprep.subr.bf16.mxu1 %v1716_v1  ;;  %v1497_v31 = vld [vmem:[#allocation14 + $0x38] sm:$0xff]  }
 0x15f   :  { %1339 = vmatpush3.bf16.msra.mxu1 %v1474_v34 }
 0x160   :  { %1340 = vmatprep.subr.bf16.mxu1 %v1716_v1 }
 0x163   :  { %1341 = vmatpush3.bf16.msra.mxu1 %v1475_v42  ;;  %v1501_v42 = vld [vmem:[#allocation14 + $0x18] sm:$0xff]  }
 0x164   :  { %1342 = vmatprep.subr.bf16.mxu1 %v1716_v1 }
 0x167   :  { %1343 = vmatpush3.bf16.msra.mxu1 %v1476_v43  ;;  %v1502_v43 = vld [vmem:[#allocation14 + $0x10] sm:$0xff]  }
 0x168   :  { %1344 = vmatprep.subr.bf16.mxu1 %v1716_v1 }
 0x16b   :  { %1345 = vmatpush3.bf16.msra.mxu1 %v1477_v44  ;;  %v1503_v44 = vld [vmem:[#allocation14 + $0x8] sm:$0xff]  }
 0x16c   :  { %1346 = vmatprep.subr.bf16.mxu1 %v1716_v1 }
 0x16f   :  { %1347 = vmatpush3.bf16.msra.mxu1 %v1478_v45  ;;  %v1504_v45 = vld [vmem:[#allocation14] sm:$0xff]  }
 0x170   :  { %1348 = vmatprep.subr.bf16.mxu1 %v1716_v1 }
 0x173   :  { %1349 = vmatpush3.bf16.msra.mxu1 %v1479_v46  ;;  %v1174_v46 = vld [vmem:[%s2003_s13] ss:$0 sm:$0xff] }
 0x174   :  { %1350 = vmatprep.subr.bf16.mxu1 %v1716_v1 }
 0x177   :  { %1351 = vmatpush3.bf16.msra.mxu1 %v1480_v47 }
 0x178   :  { %1376 = vmatprep.subr.bf16.mxu1 %v1716_v1 }
 0x21a   :  { %v400_v36 = vpop.f32.mrf.mxu1 }
 0x21b   :  { %v401_v37 = vadd.f32 %v1138_v35, %v400_v36 }
 0x21c   :  { %v1314_v38 = vpop.f32.mrf.mxu1 }
 0x21d   :  { %406 = vst [vmem:[%s2008_s18] sm:$0xff] %v401_v37  ;;  %v407_v39 = vpack.c.bf16 %v401_v37, %v401_v37 }
 0x21e   :  { %v403_v40 = vpop.f32.mrf.mxu1 }
 0x21f   :  { %1333 = vmatmul.mubr.bf16.vlgmr.msra.gmra.mxu0 %v407_v39  ;;  %v1499_v40 = vld [vmem:[#allocation14 + $0x28] sm:$0xff]  }
 0x220   :  { %v1315_v41 = vpop.f32.mrf.mxu1  ;;  %1372 = vmatprep.mubr.msk.bf16.mxu0 %vm1717_vm0, %v1716_v1  ;;  %1357 = vmatpush3.bf16.msra.mxu0 %v1481_v48 }
 0x221   :  { %1358 = vmatprep.subr.bf16.mxu0 %v1716_v1  ;;  %v1500_v41 = vld [vmem:[#allocation14 + $0x20] sm:$0xff]  }
 0x224   :  { %1359 = vmatpush3.bf16.msra.mxu0 %v1482_v61  ;;  %v1508_v61 = vld [vmem:[#allocation15 + $0x20] sm:$0xff]  }
 0x225   :  { %1360 = vmatprep.subr.bf16.mxu0 %v1716_v1 }
 0x228   :  { %1361 = vmatpush3.bf16.msra.mxu0 %v1483_v62  ;;  %v1509_v62 = vld [vmem:[#allocation15 + $0x18] sm:$0xff]  }
 0x229   :  { %1362 = vmatprep.subr.bf16.mxu0 %v1716_v1 }
 0x22c   :  { %1363 = vmatpush3.bf16.msra.mxu0 %v1484_v63  ;;  %v1510_v63 = vld [vmem:[#allocation15 + $0x10] sm:$0xff]  }
 0x22d   :  { %1364 = vmatprep.subr.bf16.mxu0 %v1716_v1 }
 0x230   :  { %1365 = vmatpush3.bf16.msra.mxu0 %v1485_v0  ;;  %v1511_v0 = vld [vmem:[#allocation15 + $0x8] sm:$0xff]  }
 0x231   :  { %1366 = vmatprep.subr.bf16.mxu0 %v1716_v1 }
 0x234   :  { %1367 = vmatpush3.bf16.msra.mxu0 %v1486_v2  ;;  %v1512_v2 = vld [vmem:[#allocation15] sm:$0xff]  }
 0x235   :  { %1368 = vmatprep.subr.bf16.mxu0 %v1716_v1 }
 0x238   :  { %1369 = vmatpush3.bf16.msra.mxu0 %v1487_v3  ;;  %v1183_v3 = vld [vmem:[%s2005_s15] ss:$0 sm:$0xff] }
 0x239   :  { %1370 = vmatprep.subr.bf16.mxu0 %v1716_v1 }
 0x23c   :  { %1371 = vmatpush3.bf16.msra.mxu0 %v1488_v4 }
 0x23d   :  { %1396 = vmatprep.subr.bf16.mxu0 %v1716_v1 }
 0x2df   :  { %v513_v50 = vpop.f32.mrf.mxu0 }
 0x2e0   :  { %v514_v51 = vadd.f32 %v1147_v49, %v513_v50 }
 0x2e1   :  { %v1334_v52 = vpop.f32.mrf.mxu0 }
 0x2e2   :  { %v520_v53 = vmul.f32 0.70710677, %v514_v51  ;;  %v519_v57 = vmul.f32 0.5, %v514_v51 }
 0x2e3   :  { %v516_v54 = vpop.f32.mrf.mxu0 }
 0x2e4   :  { %1513 = verf.f32 %v520_v53 }
 0x2e5   :  { %v1335_v55 = vpop.f32.mrf.mxu0 }
 0x2f1   :  { %v1514_v56 = vpop.eup %1513 }
 0x2f2   :  { %v522_v58 = vadd.f32 1.0, %v1514_v56 }
 0x2f4   :  { %v523_v59 = vmul.f32 %v522_v58, %v519_v57  ;;  %v1505_v58 = vld [vmem:[#allocation15 + $0x38] sm:$0xff]  }
 0x2f6   :  { %v524_v60 = vpack.c.bf16 %v523_v59, %v523_v59  ;;  %v1506_v59 = vld [vmem:[#allocation15 + $0x30] sm:$0xff]  }
 0x2f8   :  { %1353 = vmatmul.mubr.bf16.vlgmr.msra.gmra.mxu1 %v524_v60  ;;  %v1507_v60 = vld [vmem:[#allocation15 + $0x28] sm:$0xff]  }
 0x2f9   :  { %1392 = vmatprep.mubr.msk.bf16.mxu1 %vm1717_vm0, %v1716_v1  ;;  %1377 = vmatpush3.bf16.msra.mxu1 %v1489_v5 }
 0x2fa   :  { %1378 = vmatprep.subr.bf16.mxu1 %v1716_v1 }
 0x2fd   :  { %1379 = vmatpush3.bf16.msra.mxu1 %v1490_v6 }
 0x2fe   :  { %1380 = vmatprep.subr.bf16.mxu1 %v1716_v1 }
 0x301   :  { %1381 = vmatpush3.bf16.msra.mxu1 %v1491_v7 }
 0x302   :  { %1382 = vmatprep.subr.bf16.mxu1 %v1716_v1 }
 0x305   :  { %1383 = vmatpush3.bf16.msra.mxu1 %v1492_v8 }
 0x306   :  { %1384 = vmatprep.subr.bf16.mxu1 %v1716_v1 }
 0x309   :  { %1385 = vmatpush3.bf16.msra.mxu1 %v1493_v9 }
 0x30a   :  { %1386 = vmatprep.subr.bf16.mxu1 %v1716_v1 }
 0x30d   :  { %1387 = vmatpush3.bf16.msra.mxu1 %v1494_v10 }
 0x30e   :  { %1388 = vmatprep.subr.bf16.mxu1 %v1716_v1 }
 0x311   :  { %1389 = vmatpush3.bf16.msra.mxu1 %v1495_v11 }
 0x312   :  { %1390 = vmatprep.subr.bf16.mxu1 %v1716_v1 }
 0x315   :  { %1391 = vmatpush3.bf16.msra.mxu1 %v1496_v30 }
 0x316   :  { %1416 = vmatprep.subr.bf16.mxu1 %v1716_v1 }
 0x3b8   :  { %v630_v13 = vpop.f32.mrf.mxu1 }
 0x3b9   :  { %v631_v14 = vadd.f32 %v1156_v12, %v630_v13  ;;  %v999_v13 = vstv %s1193_s12 }
 0x3ba   :  { %v1354_v15 = vpop.f32.mrf.mxu1 }
 0x3bb   :  { %v637_v16 = vmul.f32 0.70710677, %v631_v14  ;;  %v636_v20 = vmul.f32 0.5, %v631_v14  ;;  %v1003_v15 = vstv %s1194_s25 }
 0x3bc   :  { %v633_v17 = vpop.f32.mrf.mxu1 }
 0x3bd   :  { %1515 = verf.f32 %v637_v16 }
 0x3be   :  { %v1355_v18 = vpop.f32.mrf.mxu1 }
 0x3bf   :  { %v1004_v18 = vmul.f32 %v1003_v15, %v1901_v27 }
 0x3ca   :  { %v1516_v19 = vpop.eup %1515 }
 0x3cb   :  { %v639_v21 = vadd.f32 1.0, %v1516_v19 }
 0x3cd   :  { %v1947_v24 = vmul.f32 %v639_v21, %v636_v20 }
 0x3cf   :  { %v643_v26 = vmul.f32 %v642_v23, %v1947_v24 }
 0x3d1   :  { %v647_v28 = vadd.f32 %v646_v25, %v643_v26 }
 0x3d3   :  { %v648_v29 = vpack.c.bf16 %v647_v28, %v647_v28 }
 0x3d5   :  { %1373 = vmatmul.mubr.bf16.vlgmr.msra.gmra.mxu0 %v648_v29 }
 0x3d6   :  { %1412 = vmatprep.mubr.msk.bf16.mxu0 %vm1717_vm0, %v1716_v1  ;;  %1397 = vmatpush3.bf16.msra.mxu0 %v1497_v31 }
 0x3d7   :  { %1398 = vmatprep.subr.bf16.mxu0 %v1716_v1 }
 0x3da   :  { %1399 = vmatpush3.bf16.msra.mxu0 %v1498_v32 }
 0x3db   :  { %1400 = vmatprep.subr.bf16.mxu0 %v1716_v1 }
 0x3de   :  { %1401 = vmatpush3.bf16.msra.mxu0 %v1499_v40 }
 0x3df   :  { %1402 = vmatprep.subr.bf16.mxu0 %v1716_v1 }
 0x3e2   :  { %1403 = vmatpush3.bf16.msra.mxu0 %v1500_v41 }
 0x3e3   :  { %1404 = vmatprep.subr.bf16.mxu0 %v1716_v1 }
 0x3e6   :  { %1405 = vmatpush3.bf16.msra.mxu0 %v1501_v42 }
 0x3e7   :  { %1406 = vmatprep.subr.bf16.mxu0 %v1716_v1 }
 0x3ea   :  { %1407 = vmatpush3.bf16.msra.mxu0 %v1502_v43 }
 0x3eb   :  { %1408 = vmatprep.subr.bf16.mxu0 %v1716_v1 }
 0x3ee   :  { %1409 = vmatpush3.bf16.msra.mxu0 %v1503_v44 }
 0x3ef   :  { %1410 = vmatprep.subr.bf16.mxu0 %v1716_v1 }
 0x3f2   :  { %1411 = vmatpush3.bf16.msra.mxu0 %v1504_v45 }
 0x495   :  { %v754_v34 = vpop.f32.mrf.mxu0 }
 0x496   :  { %v755_v35 = vadd.f32 %v1165_v33, %v754_v34 }
 0x497   :  { %v1374_v36 = vpop.f32.mrf.mxu0 }
 0x498   :  { %760 = vst [vmem:[%s2008_s18 + $0x8] sm:$0xff] %v755_v35  ;;  %v761_v37 = vpack.c.bf16 %v755_v35, %v755_v35 }
 0x499   :  { %v757_v38 = vpop.f32.mrf.mxu0 }
 0x49a   :  { %1393 = vmatmul.mubr.bf16.vlgmr.msra.gmra.mxu1 %v761_v37 }
 0x49b   :  { %v1375_v39 = vpop.f32.mrf.mxu0  ;;  %1432 = vmatprep.mubr.msk.bf16.mxu1 %vm1717_vm0, %v1716_v1  ;;  %1417 = vmatpush3.bf16.msra.mxu1 %v1505_v58 }
 0x49c   :  { %1418 = vmatprep.subr.bf16.mxu1 %v1716_v1 }
 0x49f   :  { %1419 = vmatpush3.bf16.msra.mxu1 %v1506_v59 }
 0x4a0   :  { %1420 = vmatprep.subr.bf16.mxu1 %v1716_v1 }
 0x4a3   :  { %1421 = vmatpush3.bf16.msra.mxu1 %v1507_v60 }
 0x4a4   :  { %1422 = vmatprep.subr.bf16.mxu1 %v1716_v1 }
 0x4a7   :  { %1423 = vmatpush3.bf16.msra.mxu1 %v1508_v61 }
 0x4a8   :  { %1424 = vmatprep.subr.bf16.mxu1 %v1716_v1 }
 0x4ab   :  { %1425 = vmatpush3.bf16.msra.mxu1 %v1509_v62 }
 0x4ac   :  { %1426 = vmatprep.subr.bf16.mxu1 %v1716_v1 }
 0x4af   :  { %1427 = vmatpush3.bf16.msra.mxu1 %v1510_v63 }
 0x4b0   :  { %1428 = vmatprep.subr.bf16.mxu1 %v1716_v1 }
 0x4b3   :  { %1429 = vmatpush3.bf16.msra.mxu1 %v1511_v0 }
 0x4b4   :  { %1430 = vmatprep.subr.bf16.mxu1 %v1716_v1  ;;  %v996_v1 = vstv %s1192_s24 }
 0x4b5   :  { %v997_v16 = vmul.f32 %v996_v1, %v1947_v24 }
 0x4b7   :  { %1431 = vmatpush3.bf16.msra.mxu1 %v1512_v2 }
 0x55a   :  { %v867_v47 = vpop.f32.mrf.mxu1 }
 0x55b   :  { %v868_v48 = vadd.f32 %v1174_v46, %v867_v47 }
 0x55c   :  { %v1394_v49 = vpop.f32.mrf.mxu1 }
 0x55d   :  { %v874_v50 = vmul.f32 0.70710677, %v868_v48  ;;  %v873_v54 = vmul.f32 0.5, %v868_v48 }
 0x55e   :  { %v870_v51 = vpop.f32.mrf.mxu1 }
 0x55f   :  { %1517 = verf.f32 %v874_v50 }
 0x560   :  { %v1395_v52 = vpop.f32.mrf.mxu1 }
 0x56c   :  { %v1518_v53 = vpop.eup %1517 }
 0x56d   :  { %v876_v55 = vadd.f32 1.0, %v1518_v53 }
 0x56f   :  { %v877_v56 = vmul.f32 %v876_v55, %v873_v54 }
 0x571   :  { %v878_v57 = vpack.c.bf16 %v877_v56, %v877_v56 }
 0x573   :  { %1413 = vmatmul.mubr.bf16.vlgmr.msra.gmra.mxu0 %v878_v57 }
 0x633   :  { %v984_v4 = vpop.f32.mrf.mxu0 }
 0x634   :  { %v985_v5 = vadd.f32 %v1183_v3, %v984_v4 }
 0x635   :  { %v1414_v6 = vpop.f32.mrf.mxu0 }
 0x636   :  { %v991_v7 = vmul.f32 0.70710677, %v985_v5  ;;  %v990_v11 = vmul.f32 0.5, %v985_v5 }
 0x637   :  { %v987_v8 = vpop.f32.mrf.mxu0 }
 0x638   :  { %1519 = verf.f32 %v991_v7 }
 0x639   :  { %v1415_v9 = vpop.f32.mrf.mxu0 }
 0x645   :  { %v1520_v10 = vpop.eup %1519 }
 0x646   :  { %v993_v12 = vadd.f32 1.0, %v1520_v10 }
 0x648   :  { %v994_v14 = vmul.f32 %v993_v12, %v990_v11 }
 0x64a   :  { %v1000_v17 = vmul.f32 %v999_v13, %v994_v14 }
 0x64c   :  { %v1001_v19 = vadd.f32 %v1000_v17, %v997_v16 }
 0x64e   :  { %v1005_v20 = vadd.f32 %v1004_v18, %v1001_v19 }
 0x650   :  { %v1006_v21 = vpack.c.bf16 %v1005_v20, %v1005_v20 }
 0x652   :  { %1433 = vmatmul.mubr.bf16.vlgmr.msra.gmra.mxu1 %v1006_v21 }
 0x712   :  { %v1112_v23 = vpop.f32.mrf.mxu1 }
 0x713   :  { %v1113_v25 = vadd.f32 %v1195_v22, %v1112_v23 }
 0x714   :  { %v1434_v26 = vpop.f32.mrf.mxu1 }
 0x715   :  { %1118 = vst [vmem:[%s2008_s18 + $0x10] sm:$0xff] %v1113_v25 }
 0x716   :  { %v1115_v28 = vpop.f32.mrf.mxu1 }
 0x718   :  { %v1435_v24 = vpop.f32.mrf.mxu1 }
 0x719   :  { %1123 = vsyncpa [#allocation3], 1 }
 0x71a   :  { %1124 = vsyncpa [#allocation7], 1 }
 0x71b   :  { %1125 = vsyncpa [#allocation10], 1 }
 0x71c   :  { %1126 = vsyncpa [#allocation13], 1 }
 0x71d   :  { %1127 = vsyncpa [#allocation16], 1 }
 0x71e   :  { %1128 = vsyncpa [#allocation4], 1 }

// kernel: _forward.1
= control target key start
LH: loop header
LB: loop body
LE: loop exit
PB: predicated region body
PF: predicated region fallthrough
CT: control target
= control target key end

     0   :  { %s1990_s0 = inlined_call_operand.vmem [shape: f32[4], index: 0, kind: input, shape index: {}]   ;;  %s1991_s1 = inlined_call_operand.vmem [shape: bf16[8,128], index: 1, kind: input, shape index: {}]   ;;  %s1992_s2 = inlined_call_operand.hbm [shape: bf16[128,128], index: 2, kind: input, shape index: {}]   ;;  %s1993_s3 = inlined_call_operand.vmem [shape: f32[1,128], index: 3, kind: input, shape index: {}]   ;;  %s1994_s4 = inlined_call_operand.hbm [shape: bf16[128,128], index: 4, kind: input, shape index: {}]   ;;  %s1995_s5 = inlined_call_operand.vmem [shape: f32[1,128], index: 5, kind: input, shape index: {}]   ;;  %s1996_s6 = inlined_call_operand.hbm [shape: bf16[128,128], index: 6, kind: input, shape index: {}]   ;;  %s1997_s7 = inlined_call_operand.vmem [shape: f32[1,128], index: 7, kind: input, shape index: {}]   ;;  %s1998_s8 = inlined_call_operand.hbm [shape: bf16[128,128], index: 8, kind: input, shape index: {}]   ;;  %s1999_s9 = inlined_call_operand.vmem [shape: f32[1,128], index: 9, kind: input, shape index: {}]   ;;  %s2000_s10 = inlined_call_operand.hbm [shape: bf16[128,128], index: 10, kind: input, shape index: {}]   ;;  %s2001_s11 = inlined_call_operand.vmem [shape: f32[1,128], index: 11, kind: input, shape index: {}]   ;;  %s2002_s12 = inlined_call_operand.hbm [shape: bf16[128,128], index: 12, kind: input, shape index: {}]   ;;  %s2003_s13 = inlined_call_operand.vmem [shape: f32[1,128], index: 13, kind: input, shape index: {}]   ;;  %s2004_s14 = inlined_call_operand.hbm [shape: bf16[128,128], index: 14, kind: input, shape index: {}]   ;;  %s2005_s15 = inlined_call_operand.vmem [shape: f32[1,128], index: 15, kind: input, shape index: {}]   ;;  %s2006_s16 = inlined_call_operand.hbm [shape: bf16[128,128], index: 16, kind: input, shape index: {}]   ;;  %s2007_s17 = inlined_call_operand.vmem [shape: f32[1,128], index: 17, kind: input, shape index: {}]   ;;  %s2008_s18 = inlined_call_operand.vmem [shape: f32[8,384], index: 18, kind: output, shape index: {}]  }
   0x1   :  { %2009 = sst [smem:[#allocation23_spill]] %s1990_s0 }
   0x2   :  { %2010 = sst [smem:[#allocation24_spill]] %s1991_s1 }
   0x3   :  { %2011 = sst [smem:[#allocation25_spill]] %s1992_s2 }
   0x4   :  { %23 = vsyncpa [#allocation4], 0 }
   0x5   :  { %24 = vsyncpa [#allocation3], 0 }
   0x6   :  { %25 = vsyncpa [#allocation7], 0 }
   0x7   :  { %26 = vsyncpa [#allocation10], 0 }
   0x8   :  { %27 = vsyncpa [#allocation13], 0 }
   0x9   :  { %28 = vsyncpa [#allocation16], 0  ;;  %s1705_s27 = smov [#allocation6]   ;;  %s1706_s29 = smov [#allocation9]  }
   0xa   :  { %s60_s28 = sshll.u32 %s1705_s27, 4  ;;  %s88_s30 = sshll.u32 %s1706_s29, 4  ;;  %s61_s28 = int_to_ptr.vmem [resolvable:$true] %s60_s28  ;;  %s89_s30 = int_to_ptr.vmem [resolvable:$true] %s88_s30 }
   0xb   :  { %s1529_s0 = scalar_lea.vmem %s61_s28, 1024  ;;  %p1534_p1 = scmp.lt.s32.totalorder %s61_s28, %s61_s28 }
   0xc   :  { %p1530_p0 = scmp.ne.s32.totalorder %s61_s28, %s1529_s0  ;;  %p1535_p2 = scmp.lt.s32.totalorder %s1529_s0, %s1529_s0 }
   0xe   :  { %p1536_p3 = por %p1535_p2, %p1534_p1 }
  0x10   :  { %p1537_p4 = pnand %p1536_p3, %p1530_p0 }
  0x12   :  { %1540 = shalt.err (!%p1537_p4)
}
  0x13   :  { %s1707_s19 = smov 64   ;;  %s1708_s1 = smov 4  }
  0x14   :  { %66 = dma.hbm_to_vmem [thread:$0]  %s1994_s4, 1024, %s61_s28, [#allocation7], %s1707_s19, %s1707_s19, %s1708_s1  }
  0x15   :  { %s1549_s22 = scalar_lea.vmem %s89_s30, 1024  ;;  %p1554_p6 = scmp.lt.s32.totalorder %s89_s30, %s89_s30 }
  0x16   :  { %p1550_p5 = scmp.ne.s32.totalorder %s89_s30, %s1549_s22  ;;  %p1555_p7 = scmp.lt.s32.totalorder %s1549_s22, %s1549_s22 }
  0x18   :  { %p1556_p8 = por %p1555_p7, %p1554_p6 }
  0x1a   :  { %p1557_p9 = pnand %p1556_p8, %p1550_p5 }
  0x1c   :  { %1560 = shalt.err (!%p1557_p9)
}
  0x1d   :  { %94 = dma.hbm_to_vmem [thread:$0]  %s1998_s8, 1024, %s89_s30, [#allocation10], %s1707_s19, %s1707_s19, %s1708_s1  }
  0x1e   :  { %s2012_s26 = sld [smem:[#allocation23_spill]]  ;;  %s1709_s29 = smov [#allocation12]  }
  0x1f   :  { %s116_s4 = sshll.u32 %s1709_s29, 4  ;;  %s117_s4 = int_to_ptr.vmem [resolvable:$true] %s116_s4 }
  0x20   :  { %s1569_s28 = scalar_lea.vmem %s117_s4, 1024  ;;  %p1574_p11 = scmp.lt.s32.totalorder %s117_s4, %s117_s4 }
  0x21   :  { %p1570_p10 = scmp.ne.s32.totalorder %s117_s4, %s1569_s28  ;;  %p1575_p12 = scmp.lt.s32.totalorder %s1569_s28, %s1569_s28 }
  0x23   :  { %p1576_p13 = por %p1575_p12, %p1574_p11 }
  0x24   :  { %s35_s27 = sshll.u32 %s2012_s26, 4  ;;  %s36_s27 = int_to_ptr.vmem [resolvable:$true] %s35_s27 }
  0x25   :  { %p1577_p0 = pnand %p1576_p13, %p1570_p10 }
  0x27   :  { %1580 = shalt.err (!%p1577_p0)
}
  0x28   :  { %122 = dma.hbm_to_vmem [thread:$0]  %s2002_s12, 1024, %s117_s4, [#allocation13], %s1707_s19, %s1707_s19, %s1708_s1  }
  0x29   :  { %s1581_s30 = scalar_lea.vmem %s36_s27, 16  ;;  %p1586_p2 = scmp.lt.s32.totalorder %s36_s27, %s36_s27 }
  0x2a   :  { %p1582_p1 = scmp.ne.s32.totalorder %s36_s27, %s1581_s30  ;;  %p1587_p3 = scmp.lt.s32.totalorder %s1581_s30, %s1581_s30 }
  0x2c   :  { %p1588_p4 = por %p1587_p3, %p1586_p2 }
  0x2e   :  { %p1589_p5 = pnand %p1588_p4, %p1582_p1 }
  0x30   :  { %1592 = shalt.err (!%p1589_p5)
}
  0x31   :  { %s1710_s20 = smov [#allocation2]   ;;  %s1711_s21 = smov [#allocation5]  }
  0x32   :  { %38 = dma.vmem_to_smem %s36_s27, 16, %s1710_s20, [#allocation4]  }
  0x33   :  { %s46_s22 = sshll.u32 %s1711_s21, 4  ;;  %s1712_s2 = smov [#allocation8]   ;;  %s47_s22 = int_to_ptr.vmem [resolvable:$true] %s46_s22 }
  0x34   :  { %s74_s23 = sshll.u32 %s1712_s2, 4  ;;  %s1601_s24 = scalar_lea.vmem %s47_s22, 1024  ;;  %s75_s23 = int_to_ptr.vmem [resolvable:$true] %s74_s23 }
  0x35   :  { %p1602_p6 = scmp.ne.s32.totalorder %s47_s22, %s1601_s24  ;;  %p1606_p7 = scmp.lt.s32.totalorder %s47_s22, %s47_s22 }
  0x36   :  { %p1607_p8 = scmp.lt.s32.totalorder %s1601_s24, %s1601_s24 }
  0x38   :  { %p1608_p9 = por %p1607_p8, %p1606_p7 }
  0x3a   :  { %p1609_p10 = pnand %p1608_p9, %p1602_p6 }
  0x3c   :  { %1612 = shalt.err (!%p1609_p10)
}
  0x3d   :  { %s2013_s26 = sld [smem:[#allocation25_spill]]  ;;  %s1621_s27 = scalar_lea.vmem %s75_s23, 1024 }
  0x3e   :  { %p1622_p11 = scmp.ne.s32.totalorder %s75_s23, %s1621_s27  ;;  %p1626_p12 = scmp.lt.s32.totalorder %s75_s23, %s75_s23 }
  0x3f   :  { %p1627_p13 = scmp.lt.s32.totalorder %s1621_s27, %s1621_s27 }
  0x41   :  { %p1628_p0 = por %p1627_p13, %p1626_p12 }
  0x43   :  { %52 = dma.hbm_to_vmem [thread:$0]  %s2013_s26, 1024, %s47_s22, [#allocation3], %s1707_s19, %s1707_s19, %s1708_s1  }
  0x44   :  { %p1629_p1 = pnand %p1628_p0, %p1622_p11 }
  0x46   :  { %1632 = shalt.err (!%p1629_p1)
}
  0x47   :  { %80 = dma.hbm_to_vmem [thread:$0]  %s1996_s6, 1024, %s75_s23, [#allocation7], %s1707_s19, %s1707_s19, %s1708_s1  }
  0x48   :  { %s1713_s28 = smov [#allocation11]   ;;  %s1714_s8 = smov [#allocation14]  }
  0x49   :  { %s102_s0 = sshll.u32 %s1713_s28, 4  ;;  %s130_s30 = sshll.u32 %s1714_s8, 4  ;;  %s103_s0 = int_to_ptr.vmem [resolvable:$true] %s102_s0  ;;  %s131_s30 = int_to_ptr.vmem [resolvable:$true] %s130_s30 }
  0x4a   :  { %s1641_s20 = scalar_lea.vmem %s103_s0, 1024  ;;  %p1646_p3 = scmp.lt.s32.totalorder %s103_s0, %s103_s0 }
  0x4b   :  { %p1642_p2 = scmp.ne.s32.totalorder %s103_s0, %s1641_s20  ;;  %p1647_p4 = scmp.lt.s32.totalorder %s1641_s20, %s1641_s20 }
  0x4d   :  { %p1648_p5 = por %p1647_p4, %p1646_p3 }
  0x4f   :  { %p1649_p6 = pnand %p1648_p5, %p1642_p2 }
  0x51   :  { %1652 = shalt.err (!%p1649_p6)
}
  0x52   :  { %108 = dma.hbm_to_vmem [thread:$0]  %s2000_s10, 1024, %s103_s0, [#allocation10], %s1707_s19, %s1707_s19, %s1708_s1  }
  0x53   :  { %s1661_s6 = scalar_lea.vmem %s131_s30, 1024  ;;  %p1666_p8 = scmp.lt.s32.totalorder %s131_s30, %s131_s30 }
  0x54   :  { %p1662_p7 = scmp.ne.s32.totalorder %s131_s30, %s1661_s6  ;;  %p1667_p9 = scmp.lt.s32.totalorder %s1661_s6, %s1661_s6 }
  0x56   :  { %p1668_p10 = por %p1667_p9, %p1666_p8 }
  0x58   :  { %p1669_p11 = pnand %p1668_p10, %p1662_p7 }
  0x5a   :  { %1672 = shalt.err (!%p1669_p11)
}
  0x5b   :  { %136 = dma.hbm_to_vmem [thread:$0]  %s2004_s14, 1024, %s131_s30, [#allocation13], %s1707_s19, %s1707_s19, %s1708_s1  }
  0x5c   :  { %s1715_s24 = smov [#allocation15]  }
  0x5d   :  { %s144_s12 = sshll.u32 %s1715_s24, 4  ;;  %s145_s12 = int_to_ptr.vmem [resolvable:$true] %s144_s12 }
  0x5e   :  { %s1681_s25 = scalar_lea.vmem %s145_s12, 1024  ;;  %p1686_p13 = scmp.lt.s32.totalorder %s145_s12, %s145_s12 }
  0x5f   :  { %p1682_p12 = scmp.ne.s32.totalorder %s145_s12, %s1681_s25  ;;  %p1687_p0 = scmp.lt.s32.totalorder %s1681_s25, %s1681_s25 }
  0x61   :  { %p1688_p1 = por %p1687_p0, %p1686_p13 }
  0x63   :  { %p1689_p2 = pnand %p1688_p1, %p1682_p12 }
  0x65   :  { %1692 = shalt.err (!%p1689_p2)
}
  0x66   :  { %150 = dma.hbm_to_vmem [thread:$0]  %s2006_s16, 1024, %s145_s12, [#allocation16], %s1707_s19, %s1707_s19, %s1708_s1  }
  0x67   :  { %1693 = dma.done.wait [#allocation4], 16  }
  0x68   :  { %1694 = vsyncadd [#allocation4], 4294967280 }
  0x69   :  { %1695 = dma.done.wait [#allocation3], 1024  }
  0x6a   :  { %1696 = vsyncadd [#allocation3], 4294966272 }
  0x6b   :  { %1697 = dma.done.wait [#allocation7], 2048  }
  0x6c   :  { %1698 = vsyncadd [#allocation7], 4294965248 }
  0x6d   :  { %1699 = dma.done.wait [#allocation10], 2048  }
  0x6e   :  { %1700 = vsyncadd [#allocation10], 4294965248 }
  0x6f   :  { %1701 = dma.done.wait [#allocation13], 2048  }
  0x70   :  { %1702 = vsyncadd [#allocation13], 4294965248 }
  0x71   :  { %1703 = dma.done.wait [#allocation16], 1024  }
  0x72   :  { %1704 = vsyncadd [#allocation16], 4294966272 }
  0x73   :  { %180 = sfence }
  0x74   :  { %v1449_v0 = vld [vmem:[#allocation5 + $0x38] sm:$0xff]   ;;  %v1716_v1 = vmov 0.0   ;;  %v1450_v2 = vld [vmem:[#allocation5 + $0x30] sm:$0xff]   ;;  %vm1717_vm0 = vmmov 0   ;;  %v1451_v3 = vld [vmem:[#allocation5 + $0x28] sm:$0xff]   ;;  %s2014_s19 = sld [smem:[#allocation24_spill]] }
  0x75   :  { %1276 = vmatprep.subr.bf16.mxu0 %v1716_v1  ;;  %1296 = vmatprep.subr.bf16.mxu1 %v1716_v1  ;;  %v1457_v4 = vld [vmem:[#allocation6 + $0x38] sm:$0xff]   ;;  %v1452_v5 = vld [vmem:[#allocation5 + $0x20] sm:$0xff]   ;;  %v1458_v6 = vld [vmem:[#allocation6 + $0x30] sm:$0xff]   ;;  %s641_s30 = sld [smem:[#allocation2]] }
  0x76   :  { %1277 = vmatpush3.bf16.msra.mxu0 %v1449_v0  ;;  %1292 = vmatprep.mubr.msk.bf16.mxu0 %vm1717_vm0, %v1716_v1  ;;  %v1453_v7 = vld [vmem:[#allocation5 + $0x18] sm:$0xff]   ;;  %v1459_v8 = vld [vmem:[#allocation6 + $0x28] sm:$0xff]   ;;  %v1454_v9 = vld [vmem:[#allocation5 + $0x10] sm:$0xff]   ;;  %s1192_s24 = sld [smem:[#allocation2 + $0x1]] }
  0x77   :  { %1278 = vmatprep.subr.bf16.mxu0 %v1716_v1  ;;  %1312 = vmatprep.mubr.msk.bf16.mxu1 %vm1717_vm0, %v1716_v1  ;;  %v1460_v10 = vld [vmem:[#allocation6 + $0x20] sm:$0xff]   ;;  %v1455_v11 = vld [vmem:[#allocation5 + $0x8] sm:$0xff]   ;;  %v1461_v12 = vld [vmem:[#allocation6 + $0x18] sm:$0xff]   ;;  %s1193_s12 = sld [smem:[#allocation2 + $0x2]] }
  0x78   :  { %1297 = vmatpush3.bf16.msra.mxu1 %v1457_v4  ;;  %v1456_v13 = vld [vmem:[#allocation5] sm:$0xff]   ;;  %v1462_v14 = vld [vmem:[#allocation6 + $0x10] sm:$0xff]   ;;  %v1463_v16 = vld [vmem:[#allocation6 + $0x8] sm:$0xff]   ;;  %s1194_s25 = sld [smem:[#allocation2 + $0x3]] }
  0x79   :  { %1298 = vmatprep.subr.bf16.mxu1 %v1716_v1  ;;  %v1464_v17 = vld [vmem:[#allocation6] sm:$0xff]   ;;  %v1465_v18 = vld [vmem:[#allocation8 + $0x38] sm:$0xff]   ;;  %v1466_v19 = vld [vmem:[#allocation8 + $0x30] sm:$0xff]  }
  0x7a   :  { %1279 = vmatpush3.bf16.msra.mxu0 %v1450_v2  ;;  %v182_v15 = vld [vmem:[%s2014_s19] sm:$0xf]  ;;  %v1467_v20 = vld [vmem:[#allocation8 + $0x28] sm:$0xff]   ;;  %v1469_v22 = vld [vmem:[#allocation8 + $0x18] sm:$0xff]  }
  0x7b   :  { %1280 = vmatprep.subr.bf16.mxu0 %v1716_v1  ;;  %v1468_v21 = vld [vmem:[#allocation8 + $0x20] sm:$0xff]   ;;  %v1470_v23 = vld [vmem:[#allocation8 + $0x10] sm:$0xff]   ;;  %v1471_v24 = vld [vmem:[#allocation8 + $0x8] sm:$0xff]   ;;  %s644_s20 = ssub.f32 1.0, %s641_s30 }
  0x7c   :  { %1299 = vmatpush3.bf16.msra.mxu1 %v1458_v6  ;;  %v1129_v25 = vld [vmem:[%s1993_s3] ss:$0 sm:$0xff]  ;;  %v1473_v33 = vld [vmem:[#allocation9 + $0x38] sm:$0xff]   ;;  %v1474_v34 = vld [vmem:[#allocation9 + $0x30] sm:$0xff]  }
  0x7d   :  { %1300 = vmatprep.subr.bf16.mxu1 %v1716_v1  ;;  %v1472_v32 = vld [vmem:[#allocation8] sm:$0xff]   ;;  %v1475_v42 = vld [vmem:[#allocation9 + $0x28] sm:$0xff]   ;;  %v1477_v44 = vld [vmem:[#allocation9 + $0x18] sm:$0xff]  }
  0x7e   :  { %1281 = vmatpush3.bf16.msra.mxu0 %v1451_v3  ;;  %v1138_v35 = vld [vmem:[%s1995_s5] ss:$0 sm:$0xff]  ;;  %v1478_v45 = vld [vmem:[#allocation9 + $0x10] sm:$0xff]   ;;  %v1479_v46 = vld [vmem:[#allocation9 + $0x8] sm:$0xff]  }
  0x7f   :  { %1282 = vmatprep.subr.bf16.mxu0 %v1716_v1  ;;  %v1476_v43 = vld [vmem:[#allocation9 + $0x20] sm:$0xff]   ;;  %v1481_v48 = vld [vmem:[#allocation11 + $0x38] sm:$0xff]   ;;  %v1482_v61 = vld [vmem:[#allocation11 + $0x30] sm:$0xff]  }
  0x80   :  { %1301 = vmatpush3.bf16.msra.mxu1 %v1459_v8  ;;  %v1480_v47 = vld [vmem:[#allocation9] sm:$0xff]   ;;  %v1483_v62 = vld [vmem:[#allocation11 + $0x28] sm:$0xff]   ;;  %v1485_v0 = vld [vmem:[#allocation11 + $0x18] sm:$0xff]  }
  0x81   :  { %1302 = vmatprep.subr.bf16.mxu1 %v1716_v1  ;;  %v1147_v49 = vld [vmem:[%s1997_s7] ss:$0 sm:$0xff]  ;;  %v1486_v2 = vld [vmem:[#allocation11 + $0x10] sm:$0xff]   ;;  %v1487_v3 = vld [vmem:[#allocation11 + $0x8] sm:$0xff]  }
  0x82   :  { %1283 = vmatpush3.bf16.msra.mxu0 %v1452_v5  ;;  %v1484_v63 = vld [vmem:[#allocation11 + $0x20] sm:$0xff]   ;;  %v1489_v5 = vld [vmem:[#allocation12 + $0x38] sm:$0xff]   ;;  %v1490_v6 = vld [vmem:[#allocation12 + $0x30] sm:$0xff]  }
  0x83   :  { %1284 = vmatprep.subr.bf16.mxu0 %v1716_v1  ;;  %v1488_v4 = vld [vmem:[#allocation11] sm:$0xff]  }
  0x84   :  { %1303 = vmatpush3.bf16.msra.mxu1 %v1460_v10  ;;  %v1492_v8 = vld [vmem:[#allocation12 + $0x20] sm:$0xff]   ;;  %v1494_v10 = vld [vmem:[#allocation12 + $0x10] sm:$0xff]  }
  0x85   :  { %1304 = vmatprep.subr.bf16.mxu1 %v1716_v1 }
  0x86   :  { %1285 = vmatpush3.bf16.msra.mxu0 %v1453_v7  ;;  %v1491_v7 = vld [vmem:[#allocation12 + $0x28] sm:$0xff]  }
  0x87   :  { %1286 = vmatprep.subr.bf16.mxu0 %v1716_v1 }
  0x88   :  { %1305 = vmatpush3.bf16.msra.mxu1 %v1461_v12  ;;  %v1156_v12 = vld [vmem:[%s1999_s9] ss:$0 sm:$0xff] }
  0x89   :  { %1306 = vmatprep.subr.bf16.mxu1 %v1716_v1 }
  0x8a   :  { %1287 = vmatpush3.bf16.msra.mxu0 %v1454_v9  ;;  %v1493_v9 = vld [vmem:[#allocation12 + $0x18] sm:$0xff]  }
  0x8b   :  { %1288 = vmatprep.subr.bf16.mxu0 %v1716_v1 }
  0x8c   :  { %1307 = vmatpush3.bf16.msra.mxu1 %v1462_v14 }
  0x8d   :  { %1308 = vmatprep.subr.bf16.mxu1 %v1716_v1 }
  0x8e   :  { %1289 = vmatpush3.bf16.msra.mxu0 %v1455_v11  ;;  %v1495_v11 = vld [vmem:[#allocation12 + $0x8] sm:$0xff]  }
  0x8f   :  { %1290 = vmatprep.subr.bf16.mxu0 %v1716_v1 }
  0x90   :  { %1309 = vmatpush3.bf16.msra.mxu1 %v1463_v16 }
  0x91   :  { %1310 = vmatprep.subr.bf16.mxu1 %v1716_v1 }
  0x92   :  { %1291 = vmatpush3.bf16.msra.mxu0 %v1456_v13 }
  0x93   :  { %1316 = vmatprep.subr.bf16.mxu0 %v1716_v1 }
  0x94   :  { %1311 = vmatpush3.bf16.msra.mxu1 %v1464_v17 }
  0x95   :  { %1293 = vmatmul.mubr.bf16.vlgmr.msra.gmra.mxu0 %v182_v15  ;;  %1336 = vmatprep.subr.bf16.mxu1 %v1716_v1 }
  0x96   :  { %1332 = vmatprep.mubr.msk.bf16.mxu0 %vm1717_vm0, %v1716_v1  ;;  %1317 = vmatpush3.bf16.msra.mxu0 %v1465_v18 }
  0x97   :  { %1318 = vmatprep.subr.bf16.mxu0 %v1716_v1 }
  0x9a   :  { %1319 = vmatpush3.bf16.msra.mxu0 %v1466_v19 }
  0x9b   :  { %1320 = vmatprep.subr.bf16.mxu0 %v1716_v1 }
  0x9e   :  { %1321 = vmatpush3.bf16.msra.mxu0 %v1467_v20 }
  0x9f   :  { %1322 = vmatprep.subr.bf16.mxu0 %v1716_v1 }
  0xa2   :  { %1323 = vmatpush3.bf16.msra.mxu0 %v1468_v21 }
  0xa3   :  { %1324 = vmatprep.subr.bf16.mxu0 %v1716_v1 }
  0xa6   :  { %1325 = vmatpush3.bf16.msra.mxu0 %v1469_v22  ;;  %v645_v22 = vstv %s644_s20 }
  0xa7   :  { %1326 = vmatprep.subr.bf16.mxu0 %v1716_v1 }
  0xaa   :  { %1327 = vmatpush3.bf16.msra.mxu0 %v1470_v23  ;;  %v642_v23 = vstv %s641_s30 }
  0xab   :  { %1328 = vmatprep.subr.bf16.mxu0 %v1716_v1 }
  0xae   :  { %1329 = vmatpush3.bf16.msra.mxu0 %v1471_v24 }
  0xaf   :  { %1330 = vmatprep.subr.bf16.mxu0 %v1716_v1 }
  0xb2   :  { %1331 = vmatpush3.bf16.msra.mxu0 %v1472_v32  ;;  %v1498_v32 = vld [vmem:[#allocation14 + $0x30] sm:$0xff]  }
  0xb3   :  { %1356 = vmatprep.subr.bf16.mxu0 %v1716_v1 }
 0x155   :  { %v288_v26 = vpop.f32.mrf.mxu0 }
 0x156   :  { %v1901_v27 = vadd.f32 %v1129_v25, %v288_v26 }
 0x157   :  { %v1294_v28 = vpop.f32.mrf.mxu0 }
 0x158   :  { %v294_v29 = vpack.c.bf16 %v1901_v27, %v1901_v27  ;;  %v646_v25 = vmul.f32 %v645_v22, %v1901_v27  ;;  %v1195_v22 = vld [vmem:[%s2007_s17] ss:$0 sm:$0xff] }
 0x159   :  { %v291_v30 = vpop.f32.mrf.mxu0 }
 0x15a   :  { %1313 = vmatmul.mubr.bf16.vlgmr.msra.gmra.mxu1 %v294_v29  ;;  %v1496_v30 = vld [vmem:[#allocation12] sm:$0xff]  }
 0x15b   :  { %v1295_v31 = vpop.f32.mrf.mxu0  ;;  %1352 = vmatprep.mubr.msk.bf16.mxu1 %vm1717_vm0, %v1716_v1  ;;  %1337 = vmatpush3.bf16.msra.mxu1 %v1473_v33  ;;  %v1165_v33 = vld [vmem:[%s2001_s11] ss:$0 sm:$0xff] }
 0x15c   :  { %1338 = vmatprep.subr.bf16.mxu1 %v1716_v1  ;;  %v1497_v31 = vld [vmem:[#allocation14 + $0x38] sm:$0xff]  }
 0x15f   :  { %1339 = vmatpush3.bf16.msra.mxu1 %v1474_v34 }
 0x160   :  { %1340 = vmatprep.subr.bf16.mxu1 %v1716_v1 }
 0x163   :  { %1341 = vmatpush3.bf16.msra.mxu1 %v1475_v42  ;;  %v1501_v42 = vld [vmem:[#allocation14 + $0x18] sm:$0xff]  }
 0x164   :  { %1342 = vmatprep.subr.bf16.mxu1 %v1716_v1 }
 0x167   :  { %1343 = vmatpush3.bf16.msra.mxu1 %v1476_v43  ;;  %v1502_v43 = vld [vmem:[#allocation14 + $0x10] sm:$0xff]  }
 0x168   :  { %1344 = vmatprep.subr.bf16.mxu1 %v1716_v1 }
 0x16b   :  { %1345 = vmatpush3.bf16.msra.mxu1 %v1477_v44  ;;  %v1503_v44 = vld [vmem:[#allocation14 + $0x8] sm:$0xff]  }
 0x16c   :  { %1346 = vmatprep.subr.bf16.mxu1 %v1716_v1 }
 0x16f   :  { %1347 = vmatpush3.bf16.msra.mxu1 %v1478_v45  ;;  %v1504_v45 = vld [vmem:[#allocation14] sm:$0xff]  }
 0x170   :  { %1348 = vmatprep.subr.bf16.mxu1 %v1716_v1 }
 0x173   :  { %1349 = vmatpush3.bf16.msra.mxu1 %v1479_v46  ;;  %v1174_v46 = vld [vmem:[%s2003_s13] ss:$0 sm:$0xff] }
 0x174   :  { %1350 = vmatprep.subr.bf16.mxu1 %v1716_v1 }
 0x177   :  { %1351 = vmatpush3.bf16.msra.mxu1 %v1480_v47 }
 0x178   :  { %1376 = vmatprep.subr.bf16.mxu1 %v1716_v1 }
 0x21a   :  { %v400_v36 = vpop.f32.mrf.mxu1 }
 0x21b   :  { %v401_v37 = vadd.f32 %v1138_v35, %v400_v36 }
 0x21c   :  { %v1314_v38 = vpop.f32.mrf.mxu1 }
 0x21d   :  { %406 = vst [vmem:[%s2008_s18] sm:$0xff] %v401_v37  ;;  %v407_v39 = vpack.c.bf16 %v401_v37, %v401_v37 }
 0x21e   :  { %v403_v40 = vpop.f32.mrf.mxu1 }
 0x21f   :  { %1333 = vmatmul.mubr.bf16.vlgmr.msra.gmra.mxu0 %v407_v39  ;;  %v1499_v40 = vld [vmem:[#allocation14 + $0x28] sm:$0xff]  }
 0x220   :  { %v1315_v41 = vpop.f32.mrf.mxu1  ;;  %1372 = vmatprep.mubr.msk.bf16.mxu0 %vm1717_vm0, %v1716_v1  ;;  %1357 = vmatpush3.bf16.msra.mxu0 %v1481_v48 }
 0x221   :  { %1358 = vmatprep.subr.bf16.mxu0 %v1716_v1  ;;  %v1500_v41 = vld [vmem:[#allocation14 + $0x20] sm:$0xff]  }
 0x224   :  { %1359 = vmatpush3.bf16.msra.mxu0 %v1482_v61  ;;  %v1508_v61 = vld [vmem:[#allocation15 + $0x20] sm:$0xff]  }
 0x225   :  { %1360 = vmatprep.subr.bf16.mxu0 %v1716_v1 }
 0x228   :  { %1361 = vmatpush3.bf16.msra.mxu0 %v1483_v62  ;;  %v1509_v62 = vld [vmem:[#allocation15 + $0x18] sm:$0xff]  }
 0x229   :  { %1362 = vmatprep.subr.bf16.mxu0 %v1716_v1 }
 0x22c   :  { %1363 = vmatpush3.bf16.msra.mxu0 %v1484_v63  ;;  %v1510_v63 = vld [vmem:[#allocation15 + $0x10] sm:$0xff]  }
 0x22d   :  { %1364 = vmatprep.subr.bf16.mxu0 %v1716_v1 }
 0x230   :  { %1365 = vmatpush3.bf16.msra.mxu0 %v1485_v0  ;;  %v1511_v0 = vld [vmem:[#allocation15 + $0x8] sm:$0xff]  }
 0x231   :  { %1366 = vmatprep.subr.bf16.mxu0 %v1716_v1 }
 0x234   :  { %1367 = vmatpush3.bf16.msra.mxu0 %v1486_v2  ;;  %v1512_v2 = vld [vmem:[#allocation15] sm:$0xff]  }
 0x235   :  { %1368 = vmatprep.subr.bf16.mxu0 %v1716_v1 }
 0x238   :  { %1369 = vmatpush3.bf16.msra.mxu0 %v1487_v3  ;;  %v1183_v3 = vld [vmem:[%s2005_s15] ss:$0 sm:$0xff] }
 0x239   :  { %1370 = vmatprep.subr.bf16.mxu0 %v1716_v1 }
 0x23c   :  { %1371 = vmatpush3.bf16.msra.mxu0 %v1488_v4 }
 0x23d   :  { %1396 = vmatprep.subr.bf16.mxu0 %v1716_v1 }
 0x2df   :  { %v513_v50 = vpop.f32.mrf.mxu0 }
 0x2e0   :  { %v514_v51 = vadd.f32 %v1147_v49, %v513_v50 }
 0x2e1   :  { %v1334_v52 = vpop.f32.mrf.mxu0 }
 0x2e2   :  { %v520_v53 = vmul.f32 0.70710677, %v514_v51  ;;  %v519_v57 = vmul.f32 0.5, %v514_v51 }
 0x2e3   :  { %v516_v54 = vpop.f32.mrf.mxu0 }
 0x2e4   :  { %1513 = verf.f32 %v520_v53 }
 0x2e5   :  { %v1335_v55 = vpop.f32.mrf.mxu0 }
 0x2f1   :  { %v1514_v56 = vpop.eup %1513 }
 0x2f2   :  { %v522_v58 = vadd.f32 1.0, %v1514_v56 }
 0x2f4   :  { %v523_v59 = vmul.f32 %v522_v58, %v519_v57  ;;  %v1505_v58 = vld [vmem:[#allocation15 + $0x38] sm:$0xff]  }
 0x2f6   :  { %v524_v60 = vpack.c.bf16 %v523_v59, %v523_v59  ;;  %v1506_v59 = vld [vmem:[#allocation15 + $0x30] sm:$0xff]  }
 0x2f8   :  { %1353 = vmatmul.mubr.bf16.vlgmr.msra.gmra.mxu1 %v524_v60  ;;  %v1507_v60 = vld [vmem:[#allocation15 + $0x28] sm:$0xff]  }
 0x2f9   :  { %1392 = vmatprep.mubr.msk.bf16.mxu1 %vm1717_vm0, %v1716_v1  ;;  %1377 = vmatpush3.bf16.msra.mxu1 %v1489_v5 }
 0x2fa   :  { %1378 = vmatprep.subr.bf16.mxu1 %v1716_v1 }
 0x2fd   :  { %1379 = vmatpush3.bf16.msra.mxu1 %v1490_v6 }
 0x2fe   :  { %1380 = vmatprep.subr.bf16.mxu1 %v1716_v1 }
 0x301   :  { %1381 = vmatpush3.bf16.msra.mxu1 %v1491_v7 }
 0x302   :  { %1382 = vmatprep.subr.bf16.mxu1 %v1716_v1 }
 0x305   :  { %1383 = vmatpush3.bf16.msra.mxu1 %v1492_v8 }
 0x306   :  { %1384 = vmatprep.subr.bf16.mxu1 %v1716_v1 }
 0x309   :  { %1385 = vmatpush3.bf16.msra.mxu1 %v1493_v9 }
 0x30a   :  { %1386 = vmatprep.subr.bf16.mxu1 %v1716_v1 }
 0x30d   :  { %1387 = vmatpush3.bf16.msra.mxu1 %v1494_v10 }
 0x30e   :  { %1388 = vmatprep.subr.bf16.mxu1 %v1716_v1 }
 0x311   :  { %1389 = vmatpush3.bf16.msra.mxu1 %v1495_v11 }
 0x312   :  { %1390 = vmatprep.subr.bf16.mxu1 %v1716_v1 }
 0x315   :  { %1391 = vmatpush3.bf16.msra.mxu1 %v1496_v30 }
 0x316   :  { %1416 = vmatprep.subr.bf16.mxu1 %v1716_v1 }
 0x3b8   :  { %v630_v13 = vpop.f32.mrf.mxu1 }
 0x3b9   :  { %v631_v14 = vadd.f32 %v1156_v12, %v630_v13  ;;  %v999_v13 = vstv %s1193_s12 }
 0x3ba   :  { %v1354_v15 = vpop.f32.mrf.mxu1 }
 0x3bb   :  { %v637_v16 = vmul.f32 0.70710677, %v631_v14  ;;  %v636_v20 = vmul.f32 0.5, %v631_v14  ;;  %v1003_v15 = vstv %s1194_s25 }
 0x3bc   :  { %v633_v17 = vpop.f32.mrf.mxu1 }
 0x3bd   :  { %1515 = verf.f32 %v637_v16 }
 0x3be   :  { %v1355_v18 = vpop.f32.mrf.mxu1 }
 0x3bf   :  { %v1004_v18 = vmul.f32 %v1003_v15, %v1901_v27 }
 0x3ca   :  { %v1516_v19 = vpop.eup %1515 }
 0x3cb   :  { %v639_v21 = vadd.f32 1.0, %v1516_v19 }
 0x3cd   :  { %v1947_v24 = vmul.f32 %v639_v21, %v636_v20 }
 0x3cf   :  { %v643_v26 = vmul.f32 %v642_v23, %v1947_v24 }
 0x3d1   :  { %v647_v28 = vadd.f32 %v646_v25, %v643_v26 }
 0x3d3   :  { %v648_v29 = vpack.c.bf16 %v647_v28, %v647_v28 }
 0x3d5   :  { %1373 = vmatmul.mubr.bf16.vlgmr.msra.gmra.mxu0 %v648_v29 }
 0x3d6   :  { %1412 = vmatprep.mubr.msk.bf16.mxu0 %vm1717_vm0, %v1716_v1  ;;  %1397 = vmatpush3.bf16.msra.mxu0 %v1497_v31 }
 0x3d7   :  { %1398 = vmatprep.subr.bf16.mxu0 %v1716_v1 }
 0x3da   :  { %1399 = vmatpush3.bf16.msra.mxu0 %v1498_v32 }
 0x3db   :  { %1400 = vmatprep.subr.bf16.mxu0 %v1716_v1 }
 0x3de   :  { %1401 = vmatpush3.bf16.msra.mxu0 %v1499_v40 }
 0x3df   :  { %1402 = vmatprep.subr.bf16.mxu0 %v1716_v1 }
 0x3e2   :  { %1403 = vmatpush3.bf16.msra.mxu0 %v1500_v41 }
 0x3e3   :  { %1404 = vmatprep.subr.bf16.mxu0 %v1716_v1 }
 0x3e6   :  { %1405 = vmatpush3.bf16.msra.mxu0 %v1501_v42 }
 0x3e7   :  { %1406 = vmatprep.subr.bf16.mxu0 %v1716_v1 }
 0x3ea   :  { %1407 = vmatpush3.bf16.msra.mxu0 %v1502_v43 }
 0x3eb   :  { %1408 = vmatprep.subr.bf16.mxu0 %v1716_v1 }
 0x3ee   :  { %1409 = vmatpush3.bf16.msra.mxu0 %v1503_v44 }
 0x3ef   :  { %1410 = vmatprep.subr.bf16.mxu0 %v1716_v1 }
 0x3f2   :  { %1411 = vmatpush3.bf16.msra.mxu0 %v1504_v45 }
 0x495   :  { %v754_v34 = vpop.f32.mrf.mxu0 }
 0x496   :  { %v755_v35 = vadd.f32 %v1165_v33, %v754_v34 }
 0x497   :  { %v1374_v36 = vpop.f32.mrf.mxu0 }
 0x498   :  { %760 = vst [vmem:[%s2008_s18 + $0x8] sm:$0xff] %v755_v35  ;;  %v761_v37 = vpack.c.bf16 %v755_v35, %v755_v35 }
 0x499   :  { %v757_v38 = vpop.f32.mrf.mxu0 }
 0x49a   :  { %1393 = vmatmul.mubr.bf16.vlgmr.msra.gmra.mxu1 %v761_v37 }
 0x49b   :  { %v1375_v39 = vpop.f32.mrf.mxu0  ;;  %1432 = vmatprep.mubr.msk.bf16.mxu1 %vm1717_vm0, %v1716_v1  ;;  %1417 = vmatpush3.bf16.msra.mxu1 %v1505_v58 }
 0x49c   :  { %1418 = vmatprep.subr.bf16.mxu1 %v1716_v1 }
 0x49f   :  { %1419 = vmatpush3.bf16.msra.mxu1 %v1506_v59 }
 0x4a0   :  { %1420 = vmatprep.subr.bf16.mxu1 %v1716_v1 }
 0x4a3   :  { %1421 = vmatpush3.bf16.msra.mxu1 %v1507_v60 }
 0x4a4   :  { %1422 = vmatprep.subr.bf16.mxu1 %v1716_v1 }
 0x4a7   :  { %1423 = vmatpush3.bf16.msra.mxu1 %v1508_v61 }
 0x4a8   :  { %1424 = vmatprep.subr.bf16.mxu1 %v1716_v1 }
 0x4ab   :  { %1425 = vmatpush3.bf16.msra.mxu1 %v1509_v62 }
 0x4ac   :  { %1426 = vmatprep.subr.bf16.mxu1 %v1716_v1 }
 0x4af   :  { %1427 = vmatpush3.bf16.msra.mxu1 %v1510_v63 }
 0x4b0   :  { %1428 = vmatprep.subr.bf16.mxu1 %v1716_v1 }
 0x4b3   :  { %1429 = vmatpush3.bf16.msra.mxu1 %v1511_v0 }
 0x4b4   :  { %1430 = vmatprep.subr.bf16.mxu1 %v1716_v1  ;;  %v996_v1 = vstv %s1192_s24 }
 0x4b5   :  { %v997_v16 = vmul.f32 %v996_v1, %v1947_v24 }
 0x4b7   :  { %1431 = vmatpush3.bf16.msra.mxu1 %v1512_v2 }
 0x55a   :  { %v867_v47 = vpop.f32.mrf.mxu1 }
 0x55b   :  { %v868_v48 = vadd.f32 %v1174_v46, %v867_v47 }
 0x55c   :  { %v1394_v49 = vpop.f32.mrf.mxu1 }
 0x55d   :  { %v874_v50 = vmul.f32 0.70710677, %v868_v48  ;;  %v873_v54 = vmul.f32 0.5, %v868_v48 }
 0x55e   :  { %v870_v51 = vpop.f32.mrf.mxu1 }
 0x55f   :  { %1517 = verf.f32 %v874_v50 }
 0x560   :  { %v1395_v52 = vpop.f32.mrf.mxu1 }
 0x56c   :  { %v1518_v53 = vpop.eup %1517 }
 0x56d   :  { %v876_v55 = vadd.f32 1.0, %v1518_v53 }
 0x56f   :  { %v877_v56 = vmul.f32 %v876_v55, %v873_v54 }
 0x571   :  { %v878_v57 = vpack.c.bf16 %v877_v56, %v877_v56 }
 0x573   :  { %1413 = vmatmul.mubr.bf16.vlgmr.msra.gmra.mxu0 %v878_v57 }
 0x633   :  { %v984_v4 = vpop.f32.mrf.mxu0 }
 0x634   :  { %v985_v5 = vadd.f32 %v1183_v3, %v984_v4 }
 0x635   :  { %v1414_v6 = vpop.f32.mrf.mxu0 }
 0x636   :  { %v991_v7 = vmul.f32 0.70710677, %v985_v5  ;;  %v990_v11 = vmul.f32 0.5, %v985_v5 }
 0x637   :  { %v987_v8 = vpop.f32.mrf.mxu0 }
 0x638   :  { %1519 = verf.f32 %v991_v7 }
 0x639   :  { %v1415_v9 = vpop.f32.mrf.mxu0 }
 0x645   :  { %v1520_v10 = vpop.eup %1519 }
 0x646   :  { %v993_v12 = vadd.f32 1.0, %v1520_v10 }
 0x648   :  { %v994_v14 = vmul.f32 %v993_v12, %v990_v11 }
 0x64a   :  { %v1000_v17 = vmul.f32 %v999_v13, %v994_v14 }
 0x64c   :  { %v1001_v19 = vadd.f32 %v1000_v17, %v997_v16 }
 0x64e   :  { %v1005_v20 = vadd.f32 %v1004_v18, %v1001_v19 }
 0x650   :  { %v1006_v21 = vpack.c.bf16 %v1005_v20, %v1005_v20 }
 0x652   :  { %1433 = vmatmul.mubr.bf16.vlgmr.msra.gmra.mxu1 %v1006_v21 }
 0x712   :  { %v1112_v23 = vpop.f32.mrf.mxu1 }
 0x713   :  { %v1113_v25 = vadd.f32 %v1195_v22, %v1112_v23 }
 0x714   :  { %v1434_v26 = vpop.f32.mrf.mxu1 }
 0x715   :  { %1118 = vst [vmem:[%s2008_s18 + $0x10] sm:$0xff] %v1113_v25 }
 0x716   :  { %v1115_v28 = vpop.f32.mrf.mxu1 }
 0x718   :  { %v1435_v24 = vpop.f32.mrf.mxu1 }
 0x719   :  { %1123 = vsyncpa [#allocation3], 1 }
 0x71a   :  { %1124 = vsyncpa [#allocation7], 1 }
 0x71b   :  { %1125 = vsyncpa [#allocation10], 1 }
 0x71c   :  { %1126 = vsyncpa [#allocation13], 1 }
 0x71d   :  { %1127 = vsyncpa [#allocation16], 1 }
 0x71e   :  { %1128 = vsyncpa [#allocation4], 1 }

</bundles_post_ra>
